<compile_context>
chip_gen: v7x
topology: tpu7x:2x2x1
jax: 0.10.0
libtpu: 0.0.40
codegen_flags: <defaults>
</compile_context>

<pallas_src>
import functools
import math

import jax
import jax.numpy as jnp
from jax import lax
from jax.experimental import pallas as pl
from jax.experimental.pallas import tpu as pltpu


# MXU operand dtype: weights live in bf16, activations are cast at the matmul; all vector
# math (LayerNorm, softmax, residuals) stays f32.
_DOT_DTYPE = jnp.bfloat16


def _detect_budget():
    """Generation-aware VMEM cap / row tile (v5e/v6e: 128 MiB physical, v7x: 64 MiB)."""
    try:
        cap = int(pltpu.get_tpu_info().vmem_capacity_bytes)
    except Exception:
        cap = 64 * 1024 * 1024
    if cap >= 100 * 1024 * 1024:          # v5e / v6e
        return 100 * 1024 * 1024, 512
    return 48 * 1024 * 1024, 256          # v7x (and conservative fallback)


_VMEM_LIMIT_BYTES, _ROW_TILE = _detect_budget()


def _round_up(x, m):
    return (x + m - 1) // m * m


def _mosaic_params(n_axes=1):
    return pltpu.CompilerParams(
        dimension_semantics=("parallel",) * n_axes,
        vmem_limit_bytes=_VMEM_LIMIT_BYTES)


def _pick_row_tile(m):
    if m <= _ROW_TILE:
        return _round_up(max(m, 1), 8)
    return _ROW_TILE


def _pad_rows(x2d, m_pad):
    m = x2d.shape[0]
    if m_pad == m:
        return x2d
    return jnp.pad(x2d, ((0, m_pad - m), (0, 0)))


# ---------------- Buffered(1) support probe for constant operand specs ----------------

def _probe_buffered():
    """Check that pipeline_mode=pl.Buffered(1) compiles on this JAX/Mosaic install."""
    try:
        def k(x_ref, o_ref):
            o_ref[...] = x_ref[...]
        fn = pl.pallas_call(
            k,
            out_shape=jax.ShapeDtypeStruct((8, 128), jnp.float32),
            grid=(1,),
            in_specs=[pl.BlockSpec((8, 128), lambda i: (0, 0),
                                   pipeline_mode=pl.Buffered(1))],
            out_specs=pl.BlockSpec((8, 128), lambda i: (0, 0)),
            compiler_params=_mosaic_params(1))
        jax.jit(fn).lower(jnp.zeros((8, 128), jnp.float32)).compile()
        return True
    except Exception:
        return False


_USE_BUFFERED_CONST = _probe_buffered()


def _const_spec(shape, grid_rank):
    """Spec for an operand whose block never changes across the grid (weights/biases)."""
    zeros = (0,) * len(shape)
    idx = (lambda i: zeros) if grid_rank == 1 else (lambda i, j: zeros)
    if _USE_BUFFERED_CONST:
        return pl.BlockSpec(shape, idx, pipeline_mode=pl.Buffered(1))
    return pl.BlockSpec(shape, idx)


# ------------------------------ in-kernel helpers ----------------------------

def _ln(x, g, b, eps):
    """Annotated-transformer LayerNorm: a_2*(x-mean)/(std+eps)+b_2 with unbiased std."""
    d = x.shape[-1]
    mean = jnp.mean(x, axis=-1, keepdims=True)
    diff = x - mean
    var = jnp.sum(diff * diff, axis=-1, keepdims=True) * (1.0 / (d - 1))
    return g * diff / (jnp.sqrt(var) + eps) + b


# ------------------------------ Pallas kernels ------------------------------

def _ln_matmul_kernel(x_ref, g_ref, b_ref, w_ref, bias_ref, o_ref, *, eps):
    # LayerNorm(x) @ W + bias   (W already bf16)
    x = x_ref[...].astype(jnp.float32)
    y = _ln(x, g_ref[...], b_ref[...], eps)
    acc = jnp.dot(y.astype(_DOT_DTYPE), w_ref[...],
                  preferred_element_type=jnp.float32)
    o_ref[...] = (acc + bias_ref[...]).astype(o_ref.dtype)


def _ln_qkv_kernel(x_ref, g_ref, b_ref, w_ref, bias_ref, q_ref, kv_ref, *, eps, dm):
    # LayerNorm(x) @ [Wq|Wk|Wv] + b  ->  q (bf16) and kv=[K|V] (bf16)
    x = x_ref[...].astype(jnp.float32)
    y = _ln(x, g_ref[...], b_ref[...], eps)
    acc = jnp.dot(y.astype(_DOT_DTYPE), w_ref[...],
                  preferred_element_type=jnp.float32) + bias_ref[...]
    q_ref[...] = acc[:, :dm].astype(q_ref.dtype)
    kv_ref[...] = acc[:, dm:].astype(kv_ref.dtype)


def _matmul_kernel(x_ref, w_ref, bias_ref, o_ref):
    # x @ W + bias
    acc = jnp.dot(x_ref[...].astype(_DOT_DTYPE), w_ref[...],
                  preferred_element_type=jnp.float32)
    o_ref[...] = (acc + bias_ref[...]).astype(o_ref.dtype)


def _ln_ffn_residual_kernel(x_ref, g_ref, b_ref, w1_ref, b1_ref, w2_ref, b2_ref,
                            o_ref, *, eps):
    # x + (relu(LayerNorm(x) @ W1 + b1) @ W2 + b2)  -- whole FFN sublayer in one kernel
    # TODO(synk): add a d_ff grid axis (accumulate into VMEM scratch) once bf16 W1+W2 no
    #             longer fit single-buffered in VMEM (very large d_model*d_ff on v7x).
    x = x_ref[...].astype(jnp.float32)
    y = _ln(x, g_ref[...], b_ref[...], eps)
    h = jnp.dot(y.astype(_DOT_DTYPE), w1_ref[...],
                preferred_element_type=jnp.float32) + b1_ref[...]
    h = jnp.maximum(h, 0.0)
    out = jnp.dot(h.astype(_DOT_DTYPE), w2_ref[...],
                  preferred_element_type=jnp.float32) + b2_ref[...]
    o_ref[...] = (x + out).astype(o_ref.dtype)


def _layernorm_kernel(x_ref, g_ref, b_ref, o_ref, *, eps):
    x = x_ref[...].astype(jnp.float32)
    o_ref[...] = _ln(x, g_ref[...], b_ref[...], eps).astype(o_ref.dtype)


def _mha_wo_residual_kernel(q_ref, kv_ref, wo_ref, bo_ref, res_ref, o_ref, *, heads):
    # Multi-head attention on a (tq, dm) query tile, all heads concatenated lane-dense,
    # fused with the output projection Wo and the residual add.
    # q is ALREADY pre-scaled by 1/sqrt(d_k) (folded into the Q projection weights).
    q = q_ref[0]                    # (tq, dm)  bf16
    kv = kv_ref[0]                  # (sk, 2*dm) bf16, columns = [K | V]
    dm = q.shape[-1]
    dk = dm // heads
    head_outs = []
    for h in range(heads):          # static unroll over heads
        lo, hi = h * dk, (h + 1) * dk
        qh = q[:, lo:hi]
        kh = kv[:, lo:hi]
        vh = kv[:, dm + lo:dm + hi]
        s = lax.dot_general(qh, kh, (((1,), (1,)), ((), ())),
                            preferred_element_type=jnp.float32)
        s = s - jnp.max(s, axis=-1, keepdims=True)
        p = jnp.exp(s)
        p = p / jnp.sum(p, axis=-1, keepdims=True)          # exact softmax denominator
        head_outs.append(jnp.dot(p.astype(_DOT_DTYPE), vh,
                                 preferred_element_type=jnp.float32))
    attn = jnp.concatenate(head_outs, axis=-1)               # lane-dense (tq, dm) f32
    proj = jnp.dot(attn.astype(_DOT_DTYPE), wo_ref[...],
                   preferred_element_type=jnp.float32)
    o_ref[0, :, :] = (res_ref[0].astype(jnp.float32) + proj
                      + bo_ref[...]).astype(o_ref.dtype)


# ------------------------------ kernel wrappers ------------------------------

def ln_linear(x2d, gamma, beta, w, b, *, eps=1e-6, out_dtype=None):
    m, d = x2d.shape
    n = w.shape[1]
    out_dtype = x2d.dtype if out_dtype is None else out_dtype
    tm = _pick_row_tile(m)
    m_pad = _round_up(m, tm)
    xp = _pad_rows(x2d, m_pad)
    cost = pl.CostEstimate(flops=2 * m_pad * d * n, transcendentals=0,
                           bytes_accessed=4 * m_pad * d + 2 * d * n + 2 * m_pad * n)
    out = pl.pallas_call(
        functools.partial(_ln_matmul_kernel, eps=eps),
        out_shape=jax.ShapeDtypeStruct((m_pad, n), out_dtype),
        grid=(m_pad // tm,),
        in_specs=[pl.BlockSpec((tm, d), lambda i: (i, 0)),
                  _const_spec((1, d), 1),
                  _const_spec((1, d), 1),
                  _const_spec((d, n), 1),
                  _const_spec((1, n), 1)],
        out_specs=pl.BlockSpec((tm, n), lambda i: (i, 0)),
        compiler_params=_mosaic_params(1),
        cost_estimate=cost,
    )(xp, gamma.reshape(1, d), beta.reshape(1, d), w, b.reshape(1, n))
    return out[:m] if m_pad != m else out


def ln_qkv(x2d, gamma, beta, w_qkv, b_qkv, dm, *, eps=1e-6):
    m, d = x2d.shape
    n = w_qkv.shape[1]            # 3*dm
    tm = _pick_row_tile(m)
    m_pad = _round_up(m, tm)
    xp = _pad_rows(x2d, m_pad)
    cost = pl.CostEstimate(flops=2 * m_pad * d * n, transcendentals=0,
                           bytes_accessed=4 * m_pad * d + 2 * d * n + 2 * m_pad * n)
    q, kv = pl.pallas_call(
        functools.partial(_ln_qkv_kernel, eps=eps, dm=dm),
        out_shape=(jax.ShapeDtypeStruct((m_pad, dm), _DOT_DTYPE),
                   jax.ShapeDtypeStruct((m_pad, 2 * dm), _DOT_DTYPE)),
        grid=(m_pad // tm,),
        in_specs=[pl.BlockSpec((tm, d), lambda i: (i, 0)),
                  _const_spec((1, d), 1),
                  _const_spec((1, d), 1),
                  _const_spec((d, n), 1),
                  _const_spec((1, n), 1)],
        out_specs=[pl.BlockSpec((tm, dm), lambda i: (i, 0)),
                   pl.BlockSpec((tm, 2 * dm), lambda i: (i, 0))],
        compiler_params=_mosaic_params(1),
        cost_estimate=cost,
    )(xp, gamma.reshape(1, d), beta.reshape(1, d), w_qkv, b_qkv.reshape(1, n))
    if m_pad != m:
        q, kv = q[:m], kv[:m]
    return q, kv


def linear(x2d, w, b, *, out_dtype=None):
    m, k = x2d.shape
    n = w.shape[1]
    out_dtype = x2d.dtype if out_dtype is None else out_dtype
    tm = _pick_row_tile(m)
    m_pad = _round_up(m, tm)
    xp = _pad_rows(x2d, m_pad)
    cost = pl.CostEstimate(flops=2 * m_pad * k * n, transcendentals=0,
                           bytes_accessed=4 * m_pad * k + 2 * k * n + 2 * m_pad * n)
    out = pl.pallas_call(
        _matmul_kernel,
        out_shape=jax.ShapeDtypeStruct((m_pad, n), out_dtype),
        grid=(m_pad // tm,),
        in_specs=[pl.BlockSpec((tm, k), lambda i: (i, 0)),
                  _const_spec((k, n), 1),
                  _const_spec((1, n), 1)],
        out_specs=pl.BlockSpec((tm, n), lambda i: (i, 0)),
        compiler_params=_mosaic_params(1),
        cost_estimate=cost,
    )(xp, w, b.reshape(1, n))
    return out[:m] if m_pad != m else out


def ln_ffn_residual(x2d, gamma, beta, w1, b1, w2, b2, *, eps=1e-6):
    m, d = x2d.shape
    f = w1.shape[1]
    tm = _pick_row_tile(m)
    m_pad = _round_up(m, tm)
    xp = _pad_rows(x2d, m_pad)
    cost = pl.CostEstimate(flops=4 * m_pad * d * f, transcendentals=0,
                           bytes_accessed=8 * m_pad * d + 4 * d * f)
    out = pl.pallas_call(
        functools.partial(_ln_ffn_residual_kernel, eps=eps),
        out_shape=jax.ShapeDtypeStruct((m_pad, d), x2d.dtype),
        grid=(m_pad // tm,),
        in_specs=[pl.BlockSpec((tm, d), lambda i: (i, 0)),
                  _const_spec((1, d), 1),
                  _const_spec((1, d), 1),
                  _const_spec((d, f), 1),
                  _const_spec((1, f), 1),
                  _const_spec((f, d), 1),
                  _const_spec((1, d), 1)],
        out_specs=pl.BlockSpec((tm, d), lambda i: (i, 0)),
        compiler_params=_mosaic_params(1),
        cost_estimate=cost,
    )(xp, gamma.reshape(1, d), beta.reshape(1, d),
      w1, b1.reshape(1, f), w2, b2.reshape(1, d))
    return out[:m] if m_pad != m else out


def layer_norm(x, gamma, beta, eps=1e-6):
    shape = x.shape
    d = shape[-1]
    x2 = x.reshape(-1, d)
    m = x2.shape[0]
    tm = _pick_row_tile(m)
    m_pad = _round_up(m, tm)
    xp = _pad_rows(x2, m_pad)
    out = pl.pallas_call(
        functools.partial(_layernorm_kernel, eps=eps),
        out_shape=jax.ShapeDtypeStruct((m_pad, d), x.dtype),
        grid=(m_pad // tm,),
        in_specs=[pl.BlockSpec((tm, d), lambda i: (i, 0)),
                  _const_spec((1, d), 1),
                  _const_spec((1, d), 1)],
        out_specs=pl.BlockSpec((tm, d), lambda i: (i, 0)),
        compiler_params=_mosaic_params(1),
    )(xp, gamma.reshape(1, d), beta.reshape(1, d))
    out = out[:m] if m_pad != m else out
    return out.reshape(shape)


def fused_attention(q, kv, wo, bo, residual, heads):
    """residual + MHA(q, kv) @ Wo + bo, tiled over (batch, query tiles)."""
    # TODO(synk): mask path (src_mask/tgt_mask) and Sk-blocked online softmax.
    b, sq, dm = q.shape
    sk = kv.shape[1]
    tq = _pick_row_tile(sq)
    sq_pad = _round_up(sq, tq)
    if sq_pad != sq:
        pad = ((0, 0), (0, sq_pad - sq), (0, 0))
        q = jnp.pad(q, pad)
        residual = jnp.pad(residual, pad)
    cost = pl.CostEstimate(
        flops=int(b * sq_pad * (4 * sk * dm + 2 * dm * dm)),
        transcendentals=int(b * sq_pad * sk * heads),
        bytes_accessed=int(2 * b * sq_pad * dm + 4 * b * sk * dm + 2 * dm * dm
                           + 8 * b * sq_pad * dm))
    out = pl.pallas_call(
        functools.partial(_mha_wo_residual_kernel, heads=heads),
        out_shape=jax.ShapeDtypeStruct((b, sq_pad, dm), residual.dtype),
        grid=(b, sq_pad // tq),
        in_specs=[pl.BlockSpec((1, tq, dm), lambda i, j: (i, j, 0)),
                  pl.BlockSpec((1, sk, 2 * dm), lambda i, j: (i, 0, 0)),
                  _const_spec((dm, dm), 2),
                  _const_spec((1, dm), 2),
                  pl.BlockSpec((1, tq, dm), lambda i, j: (i, j, 0))],
        out_specs=pl.BlockSpec((1, tq, dm), lambda i, j: (i, j, 0)),
        compiler_params=_mosaic_params(2),
        cost_estimate=cost,
    )(q, kv, wo, bo.reshape(1, dm), residual)
    if sq_pad != sq:
        out = out[:, :sq, :]
    return out


# ------------------------------ sublayer blocks -------------------------------

def self_attn_block(p, x, heads, eps=1e-6):
    """x + Wo(MHA(LN(x)))  --  LN+QKV fused; attention+Wo+residual fused."""
    b, s, dm = x.shape
    x2 = x.reshape(b * s, dm)
    q2, kv2 = ln_qkv(x2, p["ln_g"], p["ln_b"], p["w_qkv"], p["b_qkv"], dm, eps=eps)
    return fused_attention(q2.reshape(b, s, dm), kv2.reshape(b, s, 2 * dm),
                           p["wo"], p["bo"], x, heads)


def src_attn_block(p, x, memory, heads, eps=1e-6):
    """x + Wo(MHA(LN(x), memory, memory)) with fused KV projection of memory."""
    b, sq, dm = x.shape
    sk = memory.shape[1]
    x2 = x.reshape(b * sq, dm)
    q2 = ln_linear(x2, p["ln_g"], p["ln_b"], p["wq"], p["bq"],
                   eps=eps, out_dtype=_DOT_DTYPE)
    kv2 = linear(memory.reshape(b * sk, dm), p["w_kv"], p["b_kv"],
                 out_dtype=_DOT_DTYPE)
    return fused_attention(q2.reshape(b, sq, dm), kv2.reshape(b, sk, 2 * dm),
                           p["wo"], p["bo"], x, heads)


def ffn_block(p, x, eps=1e-6):
    b, s, dm = x.shape
    out = ln_ffn_residual(x.reshape(b * s, dm), p["ln_g"], p["ln_b"],
                          p["w1"], p["b1"], p["w2"], p["b2"], eps=eps)
    return out.reshape(b, s, dm)


# --------------------------- transformer forward -----------------------------

def encoder_forward(params, x, heads):
    for lp in params["layers"]:
        x = self_attn_block(lp["self_attn"], x, heads)
        x = ffn_block(lp["ff"], x)
    return layer_norm(x, params["norm_g"], params["norm_b"])


def decoder_forward(params, x, memory, heads):
    for lp in params["layers"]:
        x = self_attn_block(lp["self_attn"], x, heads)
        x = src_attn_block(lp["src_attn"], x, memory, heads)
        x = ffn_block(lp["ff"], x)
    return layer_norm(x, params["norm_g"], params["norm_b"])


def transformer_forward(params, src_embeded, tgt_embeded, heads):
    memory = encoder_forward(params["encoder"], src_embeded, heads)
    return decoder_forward(params["decoder"], tgt_embeded, memory, heads)


# ------------------------------- parameters ----------------------------------

def _xavier(key, shape):
    fan_in, fan_out = shape
    limit = math.sqrt(6.0 / (fan_in + fan_out))
    return jax.random.uniform(key, shape, jnp.float32, -limit, limit)


def _ln_params(dm):
    return jnp.ones((dm,), jnp.float32), jnp.zeros((dm,), jnp.float32)


def _init_self_attn(key, dm, heads):
    ks = jax.random.split(key, 4)
    scale = 1.0 / math.sqrt(dm // heads)   # 1/sqrt(d_k) folded into Q projection (bias=0)
    g, b = _ln_params(dm)
    wq = _xavier(ks[0], (dm, dm)) * scale
    wk = _xavier(ks[1], (dm, dm))
    wv = _xavier(ks[2], (dm, dm))
    return {"ln_g": g, "ln_b": b,
            "w_qkv": jnp.concatenate([wq, wk, wv], axis=1).astype(_DOT_DTYPE),
            "b_qkv": jnp.zeros((3 * dm,), jnp.float32),
            "wo": _xavier(ks[3], (dm, dm)).astype(_DOT_DTYPE),
            "bo": jnp.zeros((dm,), jnp.float32)}


def _init_cross_attn(key, dm, heads):
    ks = jax.random.split(key, 4)
    scale = 1.0 / math.sqrt(dm // heads)
    g, b = _ln_params(dm)
    return {"ln_g": g, "ln_b": b,
            "wq": (_xavier(ks[0], (dm, dm)) * scale).astype(_DOT_DTYPE),
            "bq": jnp.zeros((dm,), jnp.float32),
            "w_kv": jnp.concatenate([_xavier(ks[1], (dm, dm)),
                                     _xavier(ks[2], (dm, dm))],
                                    axis=1).astype(_DOT_DTYPE),
            "b_kv": jnp.zeros((2 * dm,), jnp.float32),
            "wo": _xavier(ks[3], (dm, dm)).astype(_DOT_DTYPE),
            "bo": jnp.zeros((dm,), jnp.float32)}


def _init_ff(key, dm, dff):
    k1, k2 = jax.random.split(key)
    g, b = _ln_params(dm)
    return {"ln_g": g, "ln_b": b,
            "w1": _xavier(k1, (dm, dff)).astype(_DOT_DTYPE),
            "b1": jnp.zeros((dff,), jnp.float32),
            "w2": _xavier(k2, (dff, dm)).astype(_DOT_DTYPE),
            "b2": jnp.zeros((dm,), jnp.float32)}


def init_transformer(key, d_model, heads, d_ff, enc_depth, dec_depth):
    k_enc, k_dec = jax.random.split(key)

    enc_layers = []
    for k in jax.random.split(k_enc, enc_depth):
        ka, kf = jax.random.split(k)
        enc_layers.append({"self_attn": _init_self_attn(ka, d_model, heads),
                           "ff": _init_ff(kf, d_model, d_ff)})
    ng, nb = _ln_params(d_model)
    encoder = {"layers": enc_layers, "norm_g": ng, "norm_b": nb}

    dec_layers = []
    for k in jax.random.split(k_dec, dec_depth):
        ka, ks, kf = jax.random.split(k, 3)
        dec_layers.append({"self_attn": _init_self_attn(ka, d_model, heads),
                           "src_attn": _init_cross_attn(ks, d_model, heads),
                           "ff": _init_ff(kf, d_model, d_ff)})
    ng, nb = _ln_params(d_model)
    decoder = {"layers": dec_layers, "norm_g": ng, "norm_b": nb}

    return {"encoder": encoder, "decoder": decoder}


# ---------------------------------- main --------------------------------------

if __name__ == "__main__":
    # Small configuration consistent with the module's constructor signature.
    d_model, heads, enc_depth, dec_depth, d_ff = 32, 4, 2, 2, 64
    batch, src_len, tgt_len = 2, 8, 8

    root = jax.random.PRNGKey(0)
    k_params, k_src, k_tgt = jax.random.split(root, 3)

    params = init_transformer(k_params, d_model, heads, d_ff, enc_depth, dec_depth)
    src_embeded = jax.random.normal(k_src, (batch, src_len, d_model), jnp.float32)
    tgt_embeded = jax.random.normal(k_tgt, (batch, tgt_len, d_model), jnp.float32)

    fwd = jax.jit(functools.partial(transformer_forward, heads=heads))
    out = jax.block_until_ready(fwd(params, src_embeded, tgt_embeded))

    assert out.shape == (batch, tgt_len, d_model)
    assert bool(jnp.all(jnp.isfinite(out)))
    print("KERNEL_OK")
</pallas_src>

<mosaic_0001>
module attributes {stable_mosaic.version = 11 : i64} {
  func.func @_ln_ffn_residual_kernel(%arg0: i32, %arg1: memref<16x32xf32, #tpu.memory_space<vmem>>, %arg2: memref<1x32xf32, #tpu.memory_space<vmem>>, %arg3: memref<1x32xf32, #tpu.memory_space<vmem>>, %arg4: memref<32x64xbf16, #tpu.memory_space<vmem>>, %arg5: memref<1x64xf32, #tpu.memory_space<vmem>>, %arg6: memref<64x32xbf16, #tpu.memory_space<vmem>>, %arg7: memref<1x32xf32, #tpu.memory_space<vmem>>, %arg8: memref<16x32xf32, #tpu.memory_space<vmem>>) attributes {dimension_semantics = [#tpu.dimension_semantics<parallel>], iteration_bounds = array<i64: 1>, scalar_prefetch = 0 : i64, scratch_operands = 0 : i64, tpu.core_type = #tpu.core_type<tc>, window_params = [{transform_indices = @transform_0, window_bounds = array<i64: 16, 32>}, {pipeline_mode = #tpu.pipeline_mode<synchronous>, transform_indices = @transform_1, window_bounds = array<i64: 1, 32>}, {pipeline_mode = #tpu.pipeline_mode<synchronous>, transform_indices = @transform_2, window_bounds = array<i64: 1, 32>}, {pipeline_mode = #tpu.pipeline_mode<synchronous>, transform_indices = @transform_3, window_bounds = array<i64: 32, 64>}, {pipeline_mode = #tpu.pipeline_mode<synchronous>, transform_indices = @transform_4, window_bounds = array<i64: 1, 64>}, {pipeline_mode = #tpu.pipeline_mode<synchronous>, transform_indices = @transform_5, window_bounds = array<i64: 64, 32>}, {pipeline_mode = #tpu.pipeline_mode<synchronous>, transform_indices = @transform_6, window_bounds = array<i64: 1, 32>}, {transform_indices = @transform_7, window_bounds = array<i64: 16, 32>}]} {
    %c0 = arith.constant 0 : index
    %c0_0 = arith.constant 0 : index
    %0 = vector.load %arg1[%c0, %c0_0] : memref<16x32xf32, #tpu.memory_space<vmem>>, vector<16x32xf32>
    %c0_1 = arith.constant 0 : index
    %c0_2 = arith.constant 0 : index
    %1 = vector.load %arg2[%c0_1, %c0_2] : memref<1x32xf32, #tpu.memory_space<vmem>>, vector<1x32xf32>
    %c0_3 = arith.constant 0 : index
    %c0_4 = arith.constant 0 : index
    %2 = vector.load %arg3[%c0_3, %c0_4] : memref<1x32xf32, #tpu.memory_space<vmem>>, vector<1x32xf32>
    %cst = arith.constant dense<0.000000e+00> : vector<16xf32>
    %3 = vector.multi_reduction <add>, %0, %cst [1] : vector<16x32xf32> to vector<16xf32>
    %4 = vector.shape_cast %3 : vector<16xf32> to vector<16x1xf32>
    %cst_5 = arith.constant 3.200000e+01 : f32
    %5 = vector.broadcast %cst_5 : f32 to vector<16x1xf32>
    %6 = arith.divf %4, %5 : vector<16x1xf32>
    %7 = vector.broadcast %6 : vector<16x1xf32> to vector<16x32xf32>
    %8 = arith.subf %0, %7 : vector<16x32xf32>
    %9 = arith.mulf %8, %8 : vector<16x32xf32>
    %cst_6 = arith.constant dense<0.000000e+00> : vector<16xf32>
    %10 = vector.multi_reduction <add>, %9, %cst_6 [1] : vector<16x32xf32> to vector<16xf32>
    %11 = vector.shape_cast %10 : vector<16xf32> to vector<16x1xf32>
    %cst_7 = arith.constant 0.0322580636 : f32
    %12 = vector.broadcast %cst_7 : f32 to vector<16x1xf32>
    %13 = arith.mulf %11, %12 : vector<16x1xf32>
    %14 = vector.broadcast %1 : vector<1x32xf32> to vector<16x32xf32>
    %15 = arith.mulf %14, %8 : vector<16x32xf32>
    %16 = math.sqrt %13 : vector<16x1xf32>
    %cst_8 = arith.constant 9.99999997E-7 : f32
    %17 = vector.broadcast %cst_8 : f32 to vector<16x1xf32>
    %18 = arith.addf %16, %17 : vector<16x1xf32>
    %19 = vector.broadcast %18 : vector<16x1xf32> to vector<16x32xf32>
    %20 = arith.divf %15, %19 : vector<16x32xf32>
    %21 = vector.broadcast %2 : vector<1x32xf32> to vector<16x32xf32>
    %22 = arith.addf %20, %21 : vector<16x32xf32>
    %23 = arith.truncf %22 : vector<16x32xf32> to vector<16x32xbf16>
    %c0_9 = arith.constant 0 : index
    %c0_10 = arith.constant 0 : index
    %24 = vector.load %arg4[%c0_9, %c0_10] : memref<32x64xbf16, #tpu.memory_space<vmem>>, vector<32x64xbf16>
    %cst_11 = arith.constant dense<0.000000e+00> : vector<16x64xf32>
    %25 = tpu.matmul %23, %24, %cst_11 {dimension_numbers = #tpu.dot_dimension_numbers<[1], [0], [0], [1], [0, 0, 1, 1], [], []>} : vector<16x32xbf16>, vector<32x64xbf16>, vector<16x64xf32> -> vector<16x64xf32>
    %c0_12 = arith.constant 0 : index
    %c0_13 = arith.constant 0 : index
    %26 = vector.load %arg5[%c0_12, %c0_13] : memref<1x64xf32, #tpu.memory_space<vmem>>, vector<1x64xf32>
    %27 = vector.broadcast %26 : vector<1x64xf32> to vector<16x64xf32>
    %28 = arith.addf %25, %27 : vector<16x64xf32>
    %cst_14 = arith.constant 0.000000e+00 : f32
    %29 = vector.broadcast %cst_14 : f32 to vector<16x64xf32>
    %30 = arith.maximumf %28, %29 : vector<16x64xf32>
    %31 = arith.truncf %30 : vector<16x64xf32> to vector<16x64xbf16>
    %c0_15 = arith.constant 0 : index
    %c0_16 = arith.constant 0 : index
    %32 = vector.load %arg6[%c0_15, %c0_16] : memref<64x32xbf16, #tpu.memory_space<vmem>>, vector<64x32xbf16>
    %cst_17 = arith.constant dense<0.000000e+00> : vector<16x32xf32>
    %33 = tpu.matmul %31, %32, %cst_17 {dimension_numbers = #tpu.dot_dimension_numbers<[1], [0], [0], [1], [0, 0, 1, 1], [], []>} : vector<16x64xbf16>, vector<64x32xbf16>, vector<16x32xf32> -> vector<16x32xf32>
    %c0_18 = arith.constant 0 : index
    %c0_19 = arith.constant 0 : index
    %34 = vector.load %arg7[%c0_18, %c0_19] : memref<1x32xf32, #tpu.memory_space<vmem>>, vector<1x32xf32>
    %35 = vector.broadcast %34 : vector<1x32xf32> to vector<16x32xf32>
    %36 = arith.addf %33, %35 : vector<16x32xf32>
    %37 = arith.addf %0, %36 : vector<16x32xf32>
    %c0_20 = arith.constant 0 : index
    %c0_21 = arith.constant 0 : index
    %38 = vector.load %arg8[%c0_20, %c0_21] : memref<16x32xf32, #tpu.memory_space<vmem>>, vector<16x32xf32>
    tpu.vector_store %arg8[%c0_20, %c0_21], %37 {strides = array<i32>} : memref<16x32xf32, #tpu.memory_space<vmem>>, vector<16x32xf32>,
    return
  }
  func.func @transform_0(%arg0: i32) -> (i32, i32) {
    %c0_i32 = arith.constant 0 : i32
    %c0_i32_0 = arith.constant 0 : i32
    return %arg0, %c0_i32 : i32, i32
  }
  func.func @transform_1(%arg0: i32) -> (i32, i32) {
    %c0_i32 = arith.constant 0 : i32
    %c0_i32_0 = arith.constant 0 : i32
    %c0_i32_1 = arith.constant 0 : i32
    return %c0_i32, %c0_i32_0 : i32, i32
  }
  func.func @transform_2(%arg0: i32) -> (i32, i32) {
    %c0_i32 = arith.constant 0 : i32
    %c0_i32_0 = arith.constant 0 : i32
    %c0_i32_1 = arith.constant 0 : i32
    return %c0_i32, %c0_i32_0 : i32, i32
  }
  func.func @transform_3(%arg0: i32) -> (i32, i32) {
    %c0_i32 = arith.constant 0 : i32
    %c0_i32_0 = arith.constant 0 : i32
    %c0_i32_1 = arith.constant 0 : i32
    return %c0_i32, %c0_i32_0 : i32, i32
  }
  func.func @transform_4(%arg0: i32) -> (i32, i32) {
    %c0_i32 = arith.constant 0 : i32
    %c0_i32_0 = arith.constant 0 : i32
    %c0_i32_1 = arith.constant 0 : i32
    return %c0_i32, %c0_i32_0 : i32, i32
  }
  func.func @transform_5(%arg0: i32) -> (i32, i32) {
    %c0_i32 = arith.constant 0 : i32
    %c0_i32_0 = arith.constant 0 : i32
    %c0_i32_1 = arith.constant 0 : i32
    return %c0_i32, %c0_i32_0 : i32, i32
  }
  func.func @transform_6(%arg0: i32) -> (i32, i32) {
    %c0_i32 = arith.constant 0 : i32
    %c0_i32_0 = arith.constant 0 : i32
    %c0_i32_1 = arith.constant 0 : i32
    return %c0_i32, %c0_i32_0 : i32, i32
  }
  func.func @transform_7(%arg0: i32) -> (i32, i32) {
    %c0_i32 = arith.constant 0 : i32
    %c0_i32_0 = arith.constant 0 : i32
    return %arg0, %c0_i32 : i32, i32
  }
}

module attributes {stable_mosaic.version = 11 : i64} {
  func.func @_ln_qkv_kernel(%arg0: i32, %arg1: memref<16x32xf32, #tpu.memory_space<vmem>>, %arg2: memref<1x32xf32, #tpu.memory_space<vmem>>, %arg3: memref<1x32xf32, #tpu.memory_space<vmem>>, %arg4: memref<32x96xbf16, #tpu.memory_space<vmem>>, %arg5: memref<1x96xf32, #tpu.memory_space<vmem>>, %arg6: memref<16x32xbf16, #tpu.memory_space<vmem>>, %arg7: memref<16x64xbf16, #tpu.memory_space<vmem>>) attributes {dimension_semantics = [#tpu.dimension_semantics<parallel>], iteration_bounds = array<i64: 1>, scalar_prefetch = 0 : i64, scratch_operands = 0 : i64, tpu.core_type = #tpu.core_type<tc>, window_params = [{transform_indices = @transform_0, window_bounds = array<i64: 16, 32>}, {pipeline_mode = #tpu.pipeline_mode<synchronous>, transform_indices = @transform_1, window_bounds = array<i64: 1, 32>}, {pipeline_mode = #tpu.pipeline_mode<synchronous>, transform_indices = @transform_2, window_bounds = array<i64: 1, 32>}, {pipeline_mode = #tpu.pipeline_mode<synchronous>, transform_indices = @transform_3, window_bounds = array<i64: 32, 96>}, {pipeline_mode = #tpu.pipeline_mode<synchronous>, transform_indices = @transform_4, window_bounds = array<i64: 1, 96>}, {transform_indices = @transform_5, window_bounds = array<i64: 16, 32>}, {transform_indices = @transform_6, window_bounds = array<i64: 16, 64>}]} {
    %c0 = arith.constant 0 : index
    %c0_0 = arith.constant 0 : index
    %0 = vector.load %arg1[%c0, %c0_0] : memref<16x32xf32, #tpu.memory_space<vmem>>, vector<16x32xf32>
    %c0_1 = arith.constant 0 : index
    %c0_2 = arith.constant 0 : index
    %1 = vector.load %arg2[%c0_1, %c0_2] : memref<1x32xf32, #tpu.memory_space<vmem>>, vector<1x32xf32>
    %c0_3 = arith.constant 0 : index
    %c0_4 = arith.constant 0 : index
    %2 = vector.load %arg3[%c0_3, %c0_4] : memref<1x32xf32, #tpu.memory_space<vmem>>, vector<1x32xf32>
    %cst = arith.constant dense<0.000000e+00> : vector<16xf32>
    %3 = vector.multi_reduction <add>, %0, %cst [1] : vector<16x32xf32> to vector<16xf32>
    %4 = vector.shape_cast %3 : vector<16xf32> to vector<16x1xf32>
    %cst_5 = arith.constant 3.200000e+01 : f32
    %5 = vector.broadcast %cst_5 : f32 to vector<16x1xf32>
    %6 = arith.divf %4, %5 : vector<16x1xf32>
    %7 = vector.broadcast %6 : vector<16x1xf32> to vector<16x32xf32>
    %8 = arith.subf %0, %7 : vector<16x32xf32>
    %9 = arith.mulf %8, %8 : vector<16x32xf32>
    %cst_6 = arith.constant dense<0.000000e+00> : vector<16xf32>
    %10 = vector.multi_reduction <add>, %9, %cst_6 [1] : vector<16x32xf32> to vector<16xf32>
    %11 = vector.shape_cast %10 : vector<16xf32> to vector<16x1xf32>
    %cst_7 = arith.constant 0.0322580636 : f32
    %12 = vector.broadcast %cst_7 : f32 to vector<16x1xf32>
    %13 = arith.mulf %11, %12 : vector<16x1xf32>
    %14 = vector.broadcast %1 : vector<1x32xf32> to vector<16x32xf32>
    %15 = arith.mulf %14, %8 : vector<16x32xf32>
    %16 = math.sqrt %13 : vector<16x1xf32>
    %cst_8 = arith.constant 9.99999997E-7 : f32
    %17 = vector.broadcast %cst_8 : f32 to vector<16x1xf32>
    %18 = arith.addf %16, %17 : vector<16x1xf32>
    %19 = vector.broadcast %18 : vector<16x1xf32> to vector<16x32xf32>
    %20 = arith.divf %15, %19 : vector<16x32xf32>
    %21 = vector.broadcast %2 : vector<1x32xf32> to vector<16x32xf32>
    %22 = arith.addf %20, %21 : vector<16x32xf32>
    %23 = arith.truncf %22 : vector<16x32xf32> to vector<16x32xbf16>
    %c0_9 = arith.constant 0 : index
    %c0_10 = arith.constant 0 : index
    %24 = vector.load %arg4[%c0_9, %c0_10] : memref<32x96xbf16, #tpu.memory_space<vmem>>, vector<32x96xbf16>
    %cst_11 = arith.constant dense<0.000000e+00> : vector<16x96xf32>
    %25 = tpu.matmul %23, %24, %cst_11 {dimension_numbers = #tpu.dot_dimension_numbers<[1], [0], [0], [1], [0, 0, 1, 1], [], []>} : vector<16x32xbf16>, vector<32x96xbf16>, vector<16x96xf32> -> vector<16x96xf32>
    %c0_12 = arith.constant 0 : index
    %c0_13 = arith.constant 0 : index
    %26 = vector.load %arg5[%c0_12, %c0_13] : memref<1x96xf32, #tpu.memory_space<vmem>>, vector<1x96xf32>
    %27 = vector.broadcast %26 : vector<1x96xf32> to vector<16x96xf32>
    %28 = arith.addf %25, %27 : vector<16x96xf32>
    %29 = vector.extract_strided_slice %28 {offsets = [0, 0], sizes = [16, 32], strides = [1, 1]} : vector<16x96xf32> to vector<16x32xf32>
    %30 = arith.truncf %29 : vector<16x32xf32> to vector<16x32xbf16>
    %c0_14 = arith.constant 0 : index
    %c0_15 = arith.constant 0 : index
    %31 = vector.load %arg6[%c0_14, %c0_15] : memref<16x32xbf16, #tpu.memory_space<vmem>>, vector<16x32xbf16>
    tpu.vector_store %arg6[%c0_14, %c0_15], %30 {strides = array<i32>} : memref<16x32xbf16, #tpu.memory_space<vmem>>, vector<16x32xbf16>,
    %32 = vector.extract_strided_slice %28 {offsets = [0, 32], sizes = [16, 64], strides = [1, 1]} : vector<16x96xf32> to vector<16x64xf32>
    %33 = arith.truncf %32 : vector<16x64xf32> to vector<16x64xbf16>
    %c0_16 = arith.constant 0 : index
    %c0_17 = arith.constant 0 : index
    %34 = vector.load %arg7[%c0_16, %c0_17] : memref<16x64xbf16, #tpu.memory_space<vmem>>, vector<16x64xbf16>
    tpu.vector_store %arg7[%c0_16, %c0_17], %33 {strides = array<i32>} : memref<16x64xbf16, #tpu.memory_space<vmem>>, vector<16x64xbf16>,
    return
  }
  func.func @transform_0(%arg0: i32) -> (i32, i32) {
    %c0_i32 = arith.constant 0 : i32
    %c0_i32_0 = arith.constant 0 : i32
    return %arg0, %c0_i32 : i32, i32
  }
  func.func @transform_1(%arg0: i32) -> (i32, i32) {
    %c0_i32 = arith.constant 0 : i32
    %c0_i32_0 = arith.constant 0 : i32
    %c0_i32_1 = arith.constant 0 : i32
    return %c0_i32, %c0_i32_0 : i32, i32
  }
  func.func @transform_2(%arg0: i32) -> (i32, i32) {
    %c0_i32 = arith.constant 0 : i32
    %c0_i32_0 = arith.constant 0 : i32
    %c0_i32_1 = arith.constant 0 : i32
    return %c0_i32, %c0_i32_0 : i32, i32
  }
  func.func @transform_3(%arg0: i32) -> (i32, i32) {
    %c0_i32 = arith.constant 0 : i32
    %c0_i32_0 = arith.constant 0 : i32
    %c0_i32_1 = arith.constant 0 : i32
    return %c0_i32, %c0_i32_0 : i32, i32
  }
  func.func @transform_4(%arg0: i32) -> (i32, i32) {
    %c0_i32 = arith.constant 0 : i32
    %c0_i32_0 = arith.constant 0 : i32
    %c0_i32_1 = arith.constant 0 : i32
    return %c0_i32, %c0_i32_0 : i32, i32
  }
  func.func @transform_5(%arg0: i32) -> (i32, i32) {
    %c0_i32 = arith.constant 0 : i32
    %c0_i32_0 = arith.constant 0 : i32
    return %arg0, %c0_i32 : i32, i32
  }
  func.func @transform_6(%arg0: i32) -> (i32, i32) {
    %c0_i32 = arith.constant 0 : i32
    %c0_i32_0 = arith.constant 0 : i32
    return %arg0, %c0_i32 : i32, i32
  }
}

module attributes {stable_mosaic.version = 11 : i64} {
  func.func @_mha_wo_residual_kernel(%arg0: i32, %arg1: i32, %arg2: memref<1x8x32xbf16, #tpu.memory_space<vmem>>, %arg3: memref<1x8x64xbf16, #tpu.memory_space<vmem>>, %arg4: memref<32x32xbf16, #tpu.memory_space<vmem>>, %arg5: memref<1x32xf32, #tpu.memory_space<vmem>>, %arg6: memref<1x8x32xf32, #tpu.memory_space<vmem>>, %arg7: memref<1x8x32xf32, #tpu.memory_space<vmem>>) attributes {dimension_semantics = [#tpu.dimension_semantics<parallel>, #tpu.dimension_semantics<parallel>], iteration_bounds = array<i64: 2, 1>, scalar_prefetch = 0 : i64, scratch_operands = 0 : i64, tpu.core_type = #tpu.core_type<tc>, window_params = [{transform_indices = @transform_0, window_bounds = array<i64: 1, 8, 32>}, {transform_indices = @transform_1, window_bounds = array<i64: 1, 8, 64>}, {pipeline_mode = #tpu.pipeline_mode<synchronous>, transform_indices = @transform_2, window_bounds = array<i64: 32, 32>}, {pipeline_mode = #tpu.pipeline_mode<synchronous>, transform_indices = @transform_3, window_bounds = array<i64: 1, 32>}, {transform_indices = @transform_4, window_bounds = array<i64: 1, 8, 32>}, {transform_indices = @transform_5, window_bounds = array<i64: 1, 8, 32>}]} {
    %c0 = arith.constant 0 : index
    %c0_0 = arith.constant 0 : index
    %c0_1 = arith.constant 0 : index
    %0 = vector.load %arg2[%c0, %c0_0, %c0_1] : memref<1x8x32xbf16, #tpu.memory_space<vmem>>, vector<1x8x32xbf16>
    %1 = vector.shape_cast %0 : vector<1x8x32xbf16> to vector<8x32xbf16>
    %c0_2 = arith.constant 0 : index
    %c0_3 = arith.constant 0 : index
    %c0_4 = arith.constant 0 : index
    %2 = vector.load %arg3[%c0_2, %c0_3, %c0_4] : memref<1x8x64xbf16, #tpu.memory_space<vmem>>, vector<1x8x64xbf16>
    %3 = vector.shape_cast %2 : vector<1x8x64xbf16> to vector<8x64xbf16>
    %4 = vector.extract_strided_slice %1 {offsets = [0, 0], sizes = [8, 8], strides = [1, 1]} : vector<8x32xbf16> to vector<8x8xbf16>
    %5 = vector.extract_strided_slice %3 {offsets = [0, 0], sizes = [8, 8], strides = [1, 1]} : vector<8x64xbf16> to vector<8x8xbf16>
    %6 = vector.extract_strided_slice %3 {offsets = [0, 32], sizes = [8, 8], strides = [1, 1]} : vector<8x64xbf16> to vector<8x8xbf16>
    %cst = arith.constant dense<0.000000e+00> : vector<8x8xf32>
    %7 = tpu.matmul %4, %5, %cst {dimension_numbers = #tpu.dot_dimension_numbers<[1], [1], [0], [0], [0, 0, 1, 0], [], []>} : vector<8x8xbf16>, vector<8x8xbf16>, vector<8x8xf32> -> vector<8x8xf32>
    %cst_5 = arith.constant dense<0xFF800000> : vector<8xf32>
    %8 = vector.multi_reduction <maximumf>, %7, %cst_5 [1] : vector<8x8xf32> to vector<8xf32>
    %9 = vector.shape_cast %8 : vector<8xf32> to vector<8x1xf32>
    %10 = vector.broadcast %9 : vector<8x1xf32> to vector<8x8xf32>
    %11 = arith.subf %7, %10 : vector<8x8xf32>
    %12 = math.exp %11 : vector<8x8xf32>
    %cst_6 = arith.constant dense<0.000000e+00> : vector<8xf32>
    %13 = vector.multi_reduction <add>, %12, %cst_6 [1] : vector<8x8xf32> to vector<8xf32>
    %14 = vector.shape_cast %13 : vector<8xf32> to vector<8x1xf32>
    %15 = vector.broadcast %14 : vector<8x1xf32> to vector<8x8xf32>
    %16 = arith.divf %12, %15 : vector<8x8xf32>
    %17 = arith.truncf %16 : vector<8x8xf32> to vector<8x8xbf16>
    %cst_7 = arith.constant dense<0.000000e+00> : vector<8x8xf32>
    %18 = tpu.matmul %17, %6, %cst_7 {dimension_numbers = #tpu.dot_dimension_numbers<[1], [0], [0], [1], [0, 0, 1, 1], [], []>} : vector<8x8xbf16>, vector<8x8xbf16>, vector<8x8xf32> -> vector<8x8xf32>
    %19 = vector.extract_strided_slice %1 {offsets = [0, 8], sizes = [8, 8], strides = [1, 1]} : vector<8x32xbf16> to vector<8x8xbf16>
    %20 = vector.extract_strided_slice %3 {offsets = [0, 8], sizes = [8, 8], strides = [1, 1]} : vector<8x64xbf16> to vector<8x8xbf16>
    %21 = vector.extract_strided_slice %3 {offsets = [0, 40], sizes = [8, 8], strides = [1, 1]} : vector<8x64xbf16> to vector<8x8xbf16>
    %cst_8 = arith.constant dense<0.000000e+00> : vector<8x8xf32>
    %22 = tpu.matmul %19, %20, %cst_8 {dimension_numbers = #tpu.dot_dimension_numbers<[1], [1], [0], [0], [0, 0, 1, 0], [], []>} : vector<8x8xbf16>, vector<8x8xbf16>, vector<8x8xf32> -> vector<8x8xf32>
    %cst_9 = arith.constant dense<0xFF800000> : vector<8xf32>
    %23 = vector.multi_reduction <maximumf>, %22, %cst_9 [1] : vector<8x8xf32> to vector<8xf32>
    %24 = vector.shape_cast %23 : vector<8xf32> to vector<8x1xf32>
    %25 = vector.broadcast %24 : vector<8x1xf32> to vector<8x8xf32>
    %26 = arith.subf %22, %25 : vector<8x8xf32>
    %27 = math.exp %26 : vector<8x8xf32>
    %cst_10 = arith.constant dense<0.000000e+00> : vector<8xf32>
    %28 = vector.multi_reduction <add>, %27, %cst_10 [1] : vector<8x8xf32> to vector<8xf32>
    %29 = vector.shape_cast %28 : vector<8xf32> to vector<8x1xf32>
    %30 = vector.broadcast %29 : vector<8x1xf32> to vector<8x8xf32>
    %31 = arith.divf %27, %30 : vector<8x8xf32>
    %32 = arith.truncf %31 : vector<8x8xf32> to vector<8x8xbf16>
    %cst_11 = arith.constant dense<0.000000e+00> : vector<8x8xf32>
    %33 = tpu.matmul %32, %21, %cst_11 {dimension_numbers = #tpu.dot_dimension_numbers<[1], [0], [0], [1], [0, 0, 1, 1], [], []>} : vector<8x8xbf16>, vector<8x8xbf16>, vector<8x8xf32> -> vector<8x8xf32>
    %34 = vector.extract_strided_slice %1 {offsets = [0, 16], sizes = [8, 8], strides = [1, 1]} : vector<8x32xbf16> to vector<8x8xbf16>
    %35 = vector.extract_strided_slice %3 {offsets = [0, 16], sizes = [8, 8], strides = [1, 1]} : vector<8x64xbf16> to vector<8x8xbf16>
    %36 = vector.extract_strided_slice %3 {offsets = [0, 48], sizes = [8, 8], strides = [1, 1]} : vector<8x64xbf16> to vector<8x8xbf16>
    %cst_12 = arith.constant dense<0.000000e+00> : vector<8x8xf32>
    %37 = tpu.matmul %34, %35, %cst_12 {dimension_numbers = #tpu.dot_dimension_numbers<[1], [1], [0], [0], [0, 0, 1, 0], [], []>} : vector<8x8xbf16>, vector<8x8xbf16>, vector<8x8xf32> -> vector<8x8xf32>
    %cst_13 = arith.constant dense<0xFF800000> : vector<8xf32>
    %38 = vector.multi_reduction <maximumf>, %37, %cst_13 [1] : vector<8x8xf32> to vector<8xf32>
    %39 = vector.shape_cast %38 : vector<8xf32> to vector<8x1xf32>
    %40 = vector.broadcast %39 : vector<8x1xf32> to vector<8x8xf32>
    %41 = arith.subf %37, %40 : vector<8x8xf32>
    %42 = math.exp %41 : vector<8x8xf32>
    %cst_14 = arith.constant dense<0.000000e+00> : vector<8xf32>
    %43 = vector.multi_reduction <add>, %42, %cst_14 [1] : vector<8x8xf32> to vector<8xf32>
    %44 = vector.shape_cast %43 : vector<8xf32> to vector<8x1xf32>
    %45 = vector.broadcast %44 : vector<8x1xf32> to vector<8x8xf32>
    %46 = arith.divf %42, %45 : vector<8x8xf32>
    %47 = arith.truncf %46 : vector<8x8xf32> to vector<8x8xbf16>
    %cst_15 = arith.constant dense<0.000000e+00> : vector<8x8xf32>
    %48 = tpu.matmul %47, %36, %cst_15 {dimension_numbers = #tpu.dot_dimension_numbers<[1], [0], [0], [1], [0, 0, 1, 1], [], []>} : vector<8x8xbf16>, vector<8x8xbf16>, vector<8x8xf32> -> vector<8x8xf32>
    %49 = vector.extract_strided_slice %1 {offsets = [0, 24], sizes = [8, 8], strides = [1, 1]} : vector<8x32xbf16> to vector<8x8xbf16>
    %50 = vector.extract_strided_slice %3 {offsets = [0, 24], sizes = [8, 8], strides = [1, 1]} : vector<8x64xbf16> to vector<8x8xbf16>
    %51 = vector.extract_strided_slice %3 {offsets = [0, 56], sizes = [8, 8], strides = [1, 1]} : vector<8x64xbf16> to vector<8x8xbf16>
    %cst_16 = arith.constant dense<0.000000e+00> : vector<8x8xf32>
    %52 = tpu.matmul %49, %50, %cst_16 {dimension_numbers = #tpu.dot_dimension_numbers<[1], [1], [0], [0], [0, 0, 1, 0], [], []>} : vector<8x8xbf16>, vector<8x8xbf16>, vector<8x8xf32> -> vector<8x8xf32>
    %cst_17 = arith.constant dense<0xFF800000> : vector<8xf32>
    %53 = vector.multi_reduction <maximumf>, %52, %cst_17 [1] : vector<8x8xf32> to vector<8xf32>
    %54 = vector.shape_cast %53 : vector<8xf32> to vector<8x1xf32>
    %55 = vector.broadcast %54 : vector<8x1xf32> to vector<8x8xf32>
    %56 = arith.subf %52, %55 : vector<8x8xf32>
    %57 = math.exp %56 : vector<8x8xf32>
    %cst_18 = arith.constant dense<0.000000e+00> : vector<8xf32>
    %58 = vector.multi_reduction <add>, %57, %cst_18 [1] : vector<8x8xf32> to vector<8xf32>
    %59 = vector.shape_cast %58 : vector<8xf32> to vector<8x1xf32>
    %60 = vector.broadcast %59 : vector<8x1xf32> to vector<8x8xf32>
    %61 = arith.divf %57, %60 : vector<8x8xf32>
    %62 = arith.truncf %61 : vector<8x8xf32> to vector<8x8xbf16>
    %cst_19 = arith.constant dense<0.000000e+00> : vector<8x8xf32>
    %63 = tpu.matmul %62, %51, %cst_19 {dimension_numbers = #tpu.dot_dimension_numbers<[1], [0], [0], [1], [0, 0, 1, 1], [], []>} : vector<8x8xbf16>, vector<8x8xbf16>, vector<8x8xf32> -> vector<8x8xf32>
    %64 = tpu.concatenate %18, %33, %48, %63 in 1 : vector<8x8xf32>, vector<8x8xf32>, vector<8x8xf32>, vector<8x8xf32> -> vector<8x32xf32>
    %65 = arith.truncf %64 : vector<8x32xf32> to vector<8x32xbf16>
    %c0_20 = arith.constant 0 : index
    %c0_21 = arith.constant 0 : index
    %66 = vector.load %arg4[%c0_20, %c0_21] : memref<32x32xbf16, #tpu.memory_space<vmem>>, vector<32x32xbf16>
    %cst_22 = arith.constant dense<0.000000e+00> : vector<8x32xf32>
    %67 = tpu.matmul %65, %66, %cst_22 {dimension_numbers = #tpu.dot_dimension_numbers<[1], [0], [0], [1], [0, 0, 1, 1], [], []>} : vector<8x32xbf16>, vector<32x32xbf16>, vector<8x32xf32> -> vector<8x32xf32>
    %c0_23 = arith.constant 0 : index
    %c0_24 = arith.constant 0 : index
    %c0_25 = arith.constant 0 : index
    %68 = vector.load %arg6[%c0_23, %c0_24, %c0_25] : memref<1x8x32xf32, #tpu.memory_space<vmem>>, vector<1x8x32xf32>
    %69 = vector.shape_cast %68 : vector<1x8x32xf32> to vector<8x32xf32>
    %70 = arith.addf %69, %67 : vector<8x32xf32>
    %c0_26 = arith.constant 0 : index
    %c0_27 = arith.constant 0 : index
    %71 = vector.load %arg5[%c0_26, %c0_27] : memref<1x32xf32, #tpu.memory_space<vmem>>, vector<1x32xf32>
    %72 = vector.broadcast %71 : vector<1x32xf32> to vector<8x32xf32>
    %73 = arith.addf %70, %72 : vector<8x32xf32>
    %c0_28 = arith.constant 0 : index
    %c0_29 = arith.constant 0 : index
    %c0_30 = arith.constant 0 : index
    %74 = vector.load %arg7[%c0_28, %c0_29, %c0_30] : memref<1x8x32xf32, #tpu.memory_space<vmem>>, vector<1x8x32xf32>
    %75 = vector.shape_cast %74 : vector<1x8x32xf32> to vector<8x32xf32>
    %76 = vector.shape_cast %73 : vector<8x32xf32> to vector<1x8x32xf32>
    tpu.vector_store %arg7[%c0_28, %c0_29, %c0_30], %76 {strides = array<i32>} : memref<1x8x32xf32, #tpu.memory_space<vmem>>, vector<1x8x32xf32>,
    return
  }
  func.func @transform_0(%arg0: i32, %arg1: i32) -> (i32, i32, i32) {
    %c0_i32 = arith.constant 0 : i32
    %c0_i32_0 = arith.constant 0 : i32
    return %arg0, %arg1, %c0_i32 : i32, i32, i32
  }
  func.func @transform_1(%arg0: i32, %arg1: i32) -> (i32, i32, i32) {
    %c0_i32 = arith.constant 0 : i32
    %c0_i32_0 = arith.constant 0 : i32
    %c0_i32_1 = arith.constant 0 : i32
    return %arg0, %c0_i32, %c0_i32_0 : i32, i32, i32
  }
  func.func @transform_2(%arg0: i32, %arg1: i32) -> (i32, i32) {
    %c0_i32 = arith.constant 0 : i32
    %c0_i32_0 = arith.constant 0 : i32
    %c0_i32_1 = arith.constant 0 : i32
    return %c0_i32, %c0_i32_0 : i32, i32
  }
  func.func @transform_3(%arg0: i32, %arg1: i32) -> (i32, i32) {
    %c0_i32 = arith.constant 0 : i32
    %c0_i32_0 = arith.constant 0 : i32
    %c0_i32_1 = arith.constant 0 : i32
    return %c0_i32, %c0_i32_0 : i32, i32
  }
  func.func @transform_4(%arg0: i32, %arg1: i32) -> (i32, i32, i32) {
    %c0_i32 = arith.constant 0 : i32
    %c0_i32_0 = arith.constant 0 : i32
    return %arg0, %arg1, %c0_i32 : i32, i32, i32
  }
  func.func @transform_5(%arg0: i32, %arg1: i32) -> (i32, i32, i32) {
    %c0_i32 = arith.constant 0 : i32
    %c0_i32_0 = arith.constant 0 : i32
    return %arg0, %arg1, %c0_i32 : i32, i32, i32
  }
}

module attributes {stable_mosaic.version = 11 : i64} {
  func.func @_layernorm_kernel(%arg0: i32, %arg1: memref<16x32xf32, #tpu.memory_space<vmem>>, %arg2: memref<1x32xf32, #tpu.memory_space<vmem>>, %arg3: memref<1x32xf32, #tpu.memory_space<vmem>>, %arg4: memref<16x32xf32, #tpu.memory_space<vmem>>) attributes {dimension_semantics = [#tpu.dimension_semantics<parallel>], iteration_bounds = array<i64: 1>, scalar_prefetch = 0 : i64, scratch_operands = 0 : i64, tpu.core_type = #tpu.core_type<tc>, window_params = [{transform_indices = @transform_0, window_bounds = array<i64: 16, 32>}, {pipeline_mode = #tpu.pipeline_mode<synchronous>, transform_indices = @transform_1, window_bounds = array<i64: 1, 32>}, {pipeline_mode = #tpu.pipeline_mode<synchronous>, transform_indices = @transform_2, window_bounds = array<i64: 1, 32>}, {transform_indices = @transform_3, window_bounds = array<i64: 16, 32>}]} {
    %c0 = arith.constant 0 : index
    %c0_0 = arith.constant 0 : index
    %0 = vector.load %arg1[%c0, %c0_0] : memref<16x32xf32, #tpu.memory_space<vmem>>, vector<16x32xf32>
    %c0_1 = arith.constant 0 : index
    %c0_2 = arith.constant 0 : index
    %1 = vector.load %arg2[%c0_1, %c0_2] : memref<1x32xf32, #tpu.memory_space<vmem>>, vector<1x32xf32>
    %c0_3 = arith.constant 0 : index
    %c0_4 = arith.constant 0 : index
    %2 = vector.load %arg3[%c0_3, %c0_4] : memref<1x32xf32, #tpu.memory_space<vmem>>, vector<1x32xf32>
    %cst = arith.constant dense<0.000000e+00> : vector<16xf32>
    %3 = vector.multi_reduction <add>, %0, %cst [1] : vector<16x32xf32> to vector<16xf32>
    %4 = vector.shape_cast %3 : vector<16xf32> to vector<16x1xf32>
    %cst_5 = arith.constant 3.200000e+01 : f32
    %5 = vector.broadcast %cst_5 : f32 to vector<16x1xf32>
    %6 = arith.divf %4, %5 : vector<16x1xf32>
    %7 = vector.broadcast %6 : vector<16x1xf32> to vector<16x32xf32>
    %8 = arith.subf %0, %7 : vector<16x32xf32>
    %9 = arith.mulf %8, %8 : vector<16x32xf32>
    %cst_6 = arith.constant dense<0.000000e+00> : vector<16xf32>
    %10 = vector.multi_reduction <add>, %9, %cst_6 [1] : vector<16x32xf32> to vector<16xf32>
    %11 = vector.shape_cast %10 : vector<16xf32> to vector<16x1xf32>
    %cst_7 = arith.constant 0.0322580636 : f32
    %12 = vector.broadcast %cst_7 : f32 to vector<16x1xf32>
    %13 = arith.mulf %11, %12 : vector<16x1xf32>
    %14 = vector.broadcast %1 : vector<1x32xf32> to vector<16x32xf32>
    %15 = arith.mulf %14, %8 : vector<16x32xf32>
    %16 = math.sqrt %13 : vector<16x1xf32>
    %cst_8 = arith.constant 9.99999997E-7 : f32
    %17 = vector.broadcast %cst_8 : f32 to vector<16x1xf32>
    %18 = arith.addf %16, %17 : vector<16x1xf32>
    %19 = vector.broadcast %18 : vector<16x1xf32> to vector<16x32xf32>
    %20 = arith.divf %15, %19 : vector<16x32xf32>
    %21 = vector.broadcast %2 : vector<1x32xf32> to vector<16x32xf32>
    %22 = arith.addf %20, %21 : vector<16x32xf32>
    %c0_9 = arith.constant 0 : index
    %c0_10 = arith.constant 0 : index
    %23 = vector.load %arg4[%c0_9, %c0_10] : memref<16x32xf32, #tpu.memory_space<vmem>>, vector<16x32xf32>
    tpu.vector_store %arg4[%c0_9, %c0_10], %22 {strides = array<i32>} : memref<16x32xf32, #tpu.memory_space<vmem>>, vector<16x32xf32>,
    return
  }
  func.func @transform_0(%arg0: i32) -> (i32, i32) {
    %c0_i32 = arith.constant 0 : i32
    %c0_i32_0 = arith.constant 0 : i32
    return %arg0, %c0_i32 : i32, i32
  }
  func.func @transform_1(%arg0: i32) -> (i32, i32) {
    %c0_i32 = arith.constant 0 : i32
    %c0_i32_0 = arith.constant 0 : i32
    %c0_i32_1 = arith.constant 0 : i32
    return %c0_i32, %c0_i32_0 : i32, i32
  }
  func.func @transform_2(%arg0: i32) -> (i32, i32) {
    %c0_i32 = arith.constant 0 : i32
    %c0_i32_0 = arith.constant 0 : i32
    %c0_i32_1 = arith.constant 0 : i32
    return %c0_i32, %c0_i32_0 : i32, i32
  }
  func.func @transform_3(%arg0: i32) -> (i32, i32) {
    %c0_i32 = arith.constant 0 : i32
    %c0_i32_0 = arith.constant 0 : i32
    return %arg0, %c0_i32 : i32, i32
  }
}

module attributes {stable_mosaic.version = 11 : i64} {
  func.func @_ln_matmul_kernel(%arg0: i32, %arg1: memref<16x32xf32, #tpu.memory_space<vmem>>, %arg2: memref<1x32xf32, #tpu.memory_space<vmem>>, %arg3: memref<1x32xf32, #tpu.memory_space<vmem>>, %arg4: memref<32x32xbf16, #tpu.memory_space<vmem>>, %arg5: memref<1x32xf32, #tpu.memory_space<vmem>>, %arg6: memref<16x32xbf16, #tpu.memory_space<vmem>>) attributes {dimension_semantics = [#tpu.dimension_semantics<parallel>], iteration_bounds = array<i64: 1>, scalar_prefetch = 0 : i64, scratch_operands = 0 : i64, tpu.core_type = #tpu.core_type<tc>, window_params = [{transform_indices = @transform_0, window_bounds = array<i64: 16, 32>}, {pipeline_mode = #tpu.pipeline_mode<synchronous>, transform_indices = @transform_1, window_bounds = array<i64: 1, 32>}, {pipeline_mode = #tpu.pipeline_mode<synchronous>, transform_indices = @transform_2, window_bounds = array<i64: 1, 32>}, {pipeline_mode = #tpu.pipeline_mode<synchronous>, transform_indices = @transform_3, window_bounds = array<i64: 32, 32>}, {pipeline_mode = #tpu.pipeline_mode<synchronous>, transform_indices = @transform_4, window_bounds = array<i64: 1, 32>}, {transform_indices = @transform_5, window_bounds = array<i64: 16, 32>}]} {
    %c0 = arith.constant 0 : index
    %c0_0 = arith.constant 0 : index
    %0 = vector.load %arg1[%c0, %c0_0] : memref<16x32xf32, #tpu.memory_space<vmem>>, vector<16x32xf32>
    %c0_1 = arith.constant 0 : index
    %c0_2 = arith.constant 0 : index
    %1 = vector.load %arg2[%c0_1, %c0_2] : memref<1x32xf32, #tpu.memory_space<vmem>>, vector<1x32xf32>
    %c0_3 = arith.constant 0 : index
    %c0_4 = arith.constant 0 : index
    %2 = vector.load %arg3[%c0_3, %c0_4] : memref<1x32xf32, #tpu.memory_space<vmem>>, vector<1x32xf32>
    %cst = arith.constant dense<0.000000e+00> : vector<16xf32>
    %3 = vector.multi_reduction <add>, %0, %cst [1] : vector<16x32xf32> to vector<16xf32>
    %4 = vector.shape_cast %3 : vector<16xf32> to vector<16x1xf32>
    %cst_5 = arith.constant 3.200000e+01 : f32
    %5 = vector.broadcast %cst_5 : f32 to vector<16x1xf32>
    %6 = arith.divf %4, %5 : vector<16x1xf32>
    %7 = vector.broadcast %6 : vector<16x1xf32> to vector<16x32xf32>
    %8 = arith.subf %0, %7 : vector<16x32xf32>
    %9 = arith.mulf %8, %8 : vector<16x32xf32>
    %cst_6 = arith.constant dense<0.000000e+00> : vector<16xf32>
    %10 = vector.multi_reduction <add>, %9, %cst_6 [1] : vector<16x32xf32> to vector<16xf32>
    %11 = vector.shape_cast %10 : vector<16xf32> to vector<16x1xf32>
    %cst_7 = arith.constant 0.0322580636 : f32
    %12 = vector.broadcast %cst_7 : f32 to vector<16x1xf32>
    %13 = arith.mulf %11, %12 : vector<16x1xf32>
    %14 = vector.broadcast %1 : vector<1x32xf32> to vector<16x32xf32>
    %15 = arith.mulf %14, %8 : vector<16x32xf32>
    %16 = math.sqrt %13 : vector<16x1xf32>
    %cst_8 = arith.constant 9.99999997E-7 : f32
    %17 = vector.broadcast %cst_8 : f32 to vector<16x1xf32>
    %18 = arith.addf %16, %17 : vector<16x1xf32>
    %19 = vector.broadcast %18 : vector<16x1xf32> to vector<16x32xf32>
    %20 = arith.divf %15, %19 : vector<16x32xf32>
    %21 = vector.broadcast %2 : vector<1x32xf32> to vector<16x32xf32>
    %22 = arith.addf %20, %21 : vector<16x32xf32>
    %23 = arith.truncf %22 : vector<16x32xf32> to vector<16x32xbf16>
    %c0_9 = arith.constant 0 : index
    %c0_10 = arith.constant 0 : index
    %24 = vector.load %arg4[%c0_9, %c0_10] : memref<32x32xbf16, #tpu.memory_space<vmem>>, vector<32x32xbf16>
    %cst_11 = arith.constant dense<0.000000e+00> : vector<16x32xf32>
    %25 = tpu.matmul %23, %24, %cst_11 {dimension_numbers = #tpu.dot_dimension_numbers<[1], [0], [0], [1], [0, 0, 1, 1], [], []>} : vector<16x32xbf16>, vector<32x32xbf16>, vector<16x32xf32> -> vector<16x32xf32>
    %c0_12 = arith.constant 0 : index
    %c0_13 = arith.constant 0 : index
    %26 = vector.load %arg5[%c0_12, %c0_13] : memref<1x32xf32, #tpu.memory_space<vmem>>, vector<1x32xf32>
    %27 = vector.broadcast %26 : vector<1x32xf32> to vector<16x32xf32>
    %28 = arith.addf %25, %27 : vector<16x32xf32>
    %29 = arith.truncf %28 : vector<16x32xf32> to vector<16x32xbf16>
    %c0_14 = arith.constant 0 : index
    %c0_15 = arith.constant 0 : index
    %30 = vector.load %arg6[%c0_14, %c0_15] : memref<16x32xbf16, #tpu.memory_space<vmem>>, vector<16x32xbf16>
    tpu.vector_store %arg6[%c0_14, %c0_15], %29 {strides = array<i32>} : memref<16x32xbf16, #tpu.memory_space<vmem>>, vector<16x32xbf16>,
    return
  }
  func.func @transform_0(%arg0: i32) -> (i32, i32) {
    %c0_i32 = arith.constant 0 : i32
    %c0_i32_0 = arith.constant 0 : i32
    return %arg0, %c0_i32 : i32, i32
  }
  func.func @transform_1(%arg0: i32) -> (i32, i32) {
    %c0_i32 = arith.constant 0 : i32
    %c0_i32_0 = arith.constant 0 : i32
    %c0_i32_1 = arith.constant 0 : i32
    return %c0_i32, %c0_i32_0 : i32, i32
  }
  func.func @transform_2(%arg0: i32) -> (i32, i32) {
    %c0_i32 = arith.constant 0 : i32
    %c0_i32_0 = arith.constant 0 : i32
    %c0_i32_1 = arith.constant 0 : i32
    return %c0_i32, %c0_i32_0 : i32, i32
  }
  func.func @transform_3(%arg0: i32) -> (i32, i32) {
    %c0_i32 = arith.constant 0 : i32
    %c0_i32_0 = arith.constant 0 : i32
    %c0_i32_1 = arith.constant 0 : i32
    return %c0_i32, %c0_i32_0 : i32, i32
  }
  func.func @transform_4(%arg0: i32) -> (i32, i32) {
    %c0_i32 = arith.constant 0 : i32
    %c0_i32_0 = arith.constant 0 : i32
    %c0_i32_1 = arith.constant 0 : i32
    return %c0_i32, %c0_i32_0 : i32, i32
  }
  func.func @transform_5(%arg0: i32) -> (i32, i32) {
    %c0_i32 = arith.constant 0 : i32
    %c0_i32_0 = arith.constant 0 : i32
    return %arg0, %c0_i32 : i32, i32
  }
}

module attributes {stable_mosaic.version = 11 : i64} {
  func.func @_matmul_kernel(%arg0: i32, %arg1: memref<16x32xf32, #tpu.memory_space<vmem>>, %arg2: memref<32x64xbf16, #tpu.memory_space<vmem>>, %arg3: memref<1x64xf32, #tpu.memory_space<vmem>>, %arg4: memref<16x64xbf16, #tpu.memory_space<vmem>>) attributes {dimension_semantics = [#tpu.dimension_semantics<parallel>], iteration_bounds = array<i64: 1>, scalar_prefetch = 0 : i64, scratch_operands = 0 : i64, tpu.core_type = #tpu.core_type<tc>, window_params = [{transform_indices = @transform_0, window_bounds = array<i64: 16, 32>}, {pipeline_mode = #tpu.pipeline_mode<synchronous>, transform_indices = @transform_1, window_bounds = array<i64: 32, 64>}, {pipeline_mode = #tpu.pipeline_mode<synchronous>, transform_indices = @transform_2, window_bounds = array<i64: 1, 64>}, {transform_indices = @transform_3, window_bounds = array<i64: 16, 64>}]} {
    %c0 = arith.constant 0 : index
    %c0_0 = arith.constant 0 : index
    %0 = vector.load %arg1[%c0, %c0_0] : memref<16x32xf32, #tpu.memory_space<vmem>>, vector<16x32xf32>
    %1 = arith.truncf %0 : vector<16x32xf32> to vector<16x32xbf16>
    %c0_1 = arith.constant 0 : index
    %c0_2 = arith.constant 0 : index
    %2 = vector.load %arg2[%c0_1, %c0_2] : memref<32x64xbf16, #tpu.memory_space<vmem>>, vector<32x64xbf16>
    %cst = arith.constant dense<0.000000e+00> : vector<16x64xf32>
    %3 = tpu.matmul %1, %2, %cst {dimension_numbers = #tpu.dot_dimension_numbers<[1], [0], [0], [1], [0, 0, 1, 1], [], []>} : vector<16x32xbf16>, vector<32x64xbf16>, vector<16x64xf32> -> vector<16x64xf32>
    %c0_3 = arith.constant 0 : index
    %c0_4 = arith.constant 0 : index
    %4 = vector.load %arg3[%c0_3, %c0_4] : memref<1x64xf32, #tpu.memory_space<vmem>>, vector<1x64xf32>
    %5 = vector.broadcast %4 : vector<1x64xf32> to vector<16x64xf32>
    %6 = arith.addf %3, %5 : vector<16x64xf32>
    %7 = arith.truncf %6 : vector<16x64xf32> to vector<16x64xbf16>
    %c0_5 = arith.constant 0 : index
    %c0_6 = arith.constant 0 : index
    %8 = vector.load %arg4[%c0_5, %c0_6] : memref<16x64xbf16, #tpu.memory_space<vmem>>, vector<16x64xbf16>
    tpu.vector_store %arg4[%c0_5, %c0_6], %7 {strides = array<i32>} : memref<16x64xbf16, #tpu.memory_space<vmem>>, vector<16x64xbf16>,
    return
  }
  func.func @transform_0(%arg0: i32) -> (i32, i32) {
    %c0_i32 = arith.constant 0 : i32
    %c0_i32_0 = arith.constant 0 : i32
    return %arg0, %c0_i32 : i32, i32
  }
  func.func @transform_1(%arg0: i32) -> (i32, i32) {
    %c0_i32 = arith.constant 0 : i32
    %c0_i32_0 = arith.constant 0 : i32
    %c0_i32_1 = arith.constant 0 : i32
    return %c0_i32, %c0_i32_0 : i32, i32
  }
  func.func @transform_2(%arg0: i32) -> (i32, i32) {
    %c0_i32 = arith.constant 0 : i32
    %c0_i32_0 = arith.constant 0 : i32
    %c0_i32_1 = arith.constant 0 : i32
    return %c0_i32, %c0_i32_0 : i32, i32
  }
  func.func @transform_3(%arg0: i32) -> (i32, i32) {
    %c0_i32 = arith.constant 0 : i32
    %c0_i32_0 = arith.constant 0 : i32
    return %arg0, %c0_i32 : i32, i32
  }
}

module attributes {stable_mosaic.version = 11 : i64} {
  func.func @_layernorm_kernel(%arg0: i32, %arg1: memref<16x32xf32, #tpu.memory_space<vmem>>, %arg2: memref<1x32xf32, #tpu.memory_space<vmem>>, %arg3: memref<1x32xf32, #tpu.memory_space<vmem>>, %arg4: memref<16x32xf32, #tpu.memory_space<vmem>>) attributes {dimension_semantics = [#tpu.dimension_semantics<parallel>], iteration_bounds = array<i64: 1>, scalar_prefetch = 0 : i64, scratch_operands = 0 : i64, tpu.core_type = #tpu.core_type<tc>, window_params = [{transform_indices = @transform_0, window_bounds = array<i64: 16, 32>}, {pipeline_mode = #tpu.pipeline_mode<synchronous>, transform_indices = @transform_1, window_bounds = array<i64: 1, 32>}, {pipeline_mode = #tpu.pipeline_mode<synchronous>, transform_indices = @transform_2, window_bounds = array<i64: 1, 32>}, {transform_indices = @transform_3, window_bounds = array<i64: 16, 32>}]} {
    %c0 = arith.constant 0 : index
    %c0_0 = arith.constant 0 : index
    %0 = vector.load %arg1[%c0, %c0_0] : memref<16x32xf32, #tpu.memory_space<vmem>>, vector<16x32xf32>
    %c0_1 = arith.constant 0 : index
    %c0_2 = arith.constant 0 : index
    %1 = vector.load %arg2[%c0_1, %c0_2] : memref<1x32xf32, #tpu.memory_space<vmem>>, vector<1x32xf32>
    %c0_3 = arith.constant 0 : index
    %c0_4 = arith.constant 0 : index
    %2 = vector.load %arg3[%c0_3, %c0_4] : memref<1x32xf32, #tpu.memory_space<vmem>>, vector<1x32xf32>
    %cst = arith.constant dense<0.000000e+00> : vector<16xf32>
    %3 = vector.multi_reduction <add>, %0, %cst [1] : vector<16x32xf32> to vector<16xf32>
    %4 = vector.shape_cast %3 : vector<16xf32> to vector<16x1xf32>
    %cst_5 = arith.constant 3.200000e+01 : f32
    %5 = vector.broadcast %cst_5 : f32 to vector<16x1xf32>
    %6 = arith.divf %4, %5 : vector<16x1xf32>
    %7 = vector.broadcast %6 : vector<16x1xf32> to vector<16x32xf32>
    %8 = arith.subf %0, %7 : vector<16x32xf32>
    %9 = arith.mulf %8, %8 : vector<16x32xf32>
    %cst_6 = arith.constant dense<0.000000e+00> : vector<16xf32>
    %10 = vector.multi_reduction <add>, %9, %cst_6 [1] : vector<16x32xf32> to vector<16xf32>
    %11 = vector.shape_cast %10 : vector<16xf32> to vector<16x1xf32>
    %cst_7 = arith.constant 0.0322580636 : f32
    %12 = vector.broadcast %cst_7 : f32 to vector<16x1xf32>
    %13 = arith.mulf %11, %12 : vector<16x1xf32>
    %14 = vector.broadcast %1 : vector<1x32xf32> to vector<16x32xf32>
    %15 = arith.mulf %14, %8 : vector<16x32xf32>
    %16 = math.sqrt %13 : vector<16x1xf32>
    %cst_8 = arith.constant 9.99999997E-7 : f32
    %17 = vector.broadcast %cst_8 : f32 to vector<16x1xf32>
    %18 = arith.addf %16, %17 : vector<16x1xf32>
    %19 = vector.broadcast %18 : vector<16x1xf32> to vector<16x32xf32>
    %20 = arith.divf %15, %19 : vector<16x32xf32>
    %21 = vector.broadcast %2 : vector<1x32xf32> to vector<16x32xf32>
    %22 = arith.addf %20, %21 : vector<16x32xf32>
    %c0_9 = arith.constant 0 : index
    %c0_10 = arith.constant 0 : index
    %23 = vector.load %arg4[%c0_9, %c0_10] : memref<16x32xf32, #tpu.memory_space<vmem>>, vector<16x32xf32>
    tpu.vector_store %arg4[%c0_9, %c0_10], %22 {strides = array<i32>} : memref<16x32xf32, #tpu.memory_space<vmem>>, vector<16x32xf32>,
    return
  }
  func.func @transform_0(%arg0: i32) -> (i32, i32) {
    %c0_i32 = arith.constant 0 : i32
    %c0_i32_0 = arith.constant 0 : i32
    return %arg0, %c0_i32 : i32, i32
  }
  func.func @transform_1(%arg0: i32) -> (i32, i32) {
    %c0_i32 = arith.constant 0 : i32
    %c0_i32_0 = arith.constant 0 : i32
    %c0_i32_1 = arith.constant 0 : i32
    return %c0_i32, %c0_i32_0 : i32, i32
  }
  func.func @transform_2(%arg0: i32) -> (i32, i32) {
    %c0_i32 = arith.constant 0 : i32
    %c0_i32_0 = arith.constant 0 : i32
    %c0_i32_1 = arith.constant 0 : i32
    return %c0_i32, %c0_i32_0 : i32, i32
  }
  func.func @transform_3(%arg0: i32) -> (i32, i32) {
    %c0_i32 = arith.constant 0 : i32
    %c0_i32_0 = arith.constant 0 : i32
    return %arg0, %c0_i32 : i32, i32
  }
}

</mosaic_0001>

<bundles_post_ra>
// kernel: transformer_forward.20
= control target key start
LH: loop header
LB: loop body
LE: loop exit
PB: predicated region body
PF: predicated region fallthrough
CT: control target
= control target key end

     0   :  { %vm27_vm0 = vcmask 261120   ;;  %v215_v14 = vmov 0.0   ;;  %vm216_vm1 = vmmov 0   ;;  %vm161_vm6 = vcmask 257024   ;;  %s217_s9 = smov 96   ;;  %s291_s0 = inlined_call_operand.vmem [shape: f32[16,32], index: 0, kind: input, shape index: {}]   ;;  %s292_s3 = inlined_call_operand.vmem [shape: bf16[32,96], index: 3, kind: input, shape index: {}]   ;;  %s293_s1 = inlined_call_operand.vmem [shape: f32[1,32], index: 1, kind: input, shape index: {}]   ;;  %s294_s2 = inlined_call_operand.vmem [shape: f32[1,32], index: 2, kind: input, shape index: {}]   ;;  %s295_s4 = inlined_call_operand.vmem [shape: f32[1,96], index: 4, kind: input, shape index: {}]   ;;  %s296_s5 = inlined_call_operand.vmem [shape: bf16[16,32], index: 5, kind: output, shape index: {0}]   ;;  %s297_s6 = inlined_call_operand.vmem [shape: bf16[16,64], index: 6, kind: output, shape index: {1}]  }
   0x1   :  { %v23_v0 = vld [vmem:[%s291_s0] sm:$0xff]  ;;  %v24_v1 = vld [vmem:[%s291_s0 + $0x8] sm:$0xff]  ;;  %194 = vmatprep.subr.bf16.mxu0 %v215_v14  ;;  %198 = vmatprep.mubr.msk.bf16.mxu0 %vm216_vm1, %v215_v14  ;;  %vm170_vm7 = vcmask 519168  }
   0x2   :  { %v28_v2 = vsel %vm27_vm0, %v23_v0, 0.0  ;;  %v31_v3 = vsel %vm27_vm0, %v24_v1, 0.0  ;;  %v205_v15 = vld [vmem:[%s292_s3] sm:$0xff]   ;;  %v206_v16 = vld [vmem:[%s292_s3 + $0x8] sm:$0xff]  }
   0x3   :  { %29 = vadd.xlane.f32.xlu0 %v28_v2  ;;  %195 = vmatpush3.bf16.msra.mxu0 %v205_v15  ;;  %v181_v33 = vld [vmem:[%s293_s1] ss:$0 sm:$0xff] }
   0x4   :  { %196 = vmatprep.subr.bf16.mxu0 %v215_v14  ;;  %v182_v39 = vld [vmem:[%s294_s2] ss:$0 sm:$0xff] }
   0x5   :  { %v183_v44 = vld [vmem:[%s295_s4] ss:$0 sm:$0xff] }
   0x7   :  { %32 = vadd.xlane.f32.xlu0 %v31_v3  ;;  %197 = vmatpush3.bf16.msra.mxu0 %v206_v16 }
  0x90   :  { %v30_v4 = vpop.xlane.xlu0 %29 }
  0x91   :  { %v35_v5 = vmul.f32 0.03125, %v30_v4 }
  0x93   :  { %v37_v6 = vsub.f32 %v23_v0, %v35_v5 }
  0x94   :  { %v33_v7 = vpop.xlane.xlu0 %32 }
  0x95   :  { %v36_v8 = vmul.f32 0.03125, %v33_v7  ;;  %v39_v9 = vmul.f32 %v37_v6, %v37_v6  ;;  %v55_v35 = vmul.f32 %v181_v33, %v37_v6 }
  0x97   :  { %v38_v10 = vsub.f32 %v24_v1, %v36_v8  ;;  %v41_v11 = vsel %vm27_vm0, %v39_v9, 0.0 }
  0x98   :  { %42 = vadd.xlane.f32.xlu1 %v41_v11 }
  0x99   :  { %v40_v12 = vmul.f32 %v38_v10, %v38_v10  ;;  %v56_v36 = vmul.f32 %v181_v33, %v38_v10 }
  0x9b   :  { %v44_v13 = vsel %vm27_vm0, %v40_v12, 0.0 }
  0x9c   :  { %45 = vadd.xlane.f32.xlu1 %v44_v13 }
 0x125   :  { %v43_v17 = vpop.xlane.xlu1 %42 }
 0x126   :  { %v47_v18 = vmul.f32 0.032258064, %v43_v17 }
 0x128   :  { %207 = vrsqrt.f32 %v47_v18  ;;  %vm59_vm2 = vcmp.eq.f32.partialorder %v47_v18, inf  ;;  %v62_v23 = vand.u32 2147483648, %v47_v18  ;;  %vm61_vm3 = vcmp.eq.f32.partialorder %v47_v18, 0.0 }
 0x129   :  { %v46_v19 = vpop.xlane.xlu1 %45 }
 0x12a   :  { %v48_v20 = vmul.f32 0.032258064, %v46_v19 }
 0x12c   :  { %209 = vrsqrt.f32 %v48_v20  ;;  %vm66_vm4 = vcmp.eq.f32.partialorder %v48_v20, inf  ;;  %v69_v29 = vand.u32 2147483648, %v48_v20  ;;  %vm68_vm5 = vcmp.eq.f32.partialorder %v48_v20, 0.0 }
 0x132   :  { %v208_v21 = vpop.eup %207 }
 0x133   :  { %v58_v22 = vmul.f32 %v208_v21, %v47_v18 }
 0x135   :  { %v60_v24 = vsel %vm59_vm2, %v47_v18, %v58_v22 }
 0x136   :  { %v210_v25 = vpop.eup %209  ;;  %v63_v26 = vsel %vm61_vm3, %v62_v23, %v60_v24 }
 0x137   :  { %v71_v27 = vadd.f32 1e-06, %v63_v26  ;;  %v65_v28 = vmul.f32 %v210_v25, %v48_v20 }
 0x139   :  { %211 = vrcp.f32 %v71_v27  ;;  %v67_v30 = vsel %vm66_vm4, %v48_v20, %v65_v28 }
 0x13a   :  { %v70_v31 = vsel %vm68_vm5, %v69_v29, %v67_v30 }
 0x13b   :  { %v72_v32 = vadd.f32 1e-06, %v70_v31 }
 0x13d   :  { %213 = vrcp.f32 %v72_v32 }
 0x143   :  { %v212_v34 = vpop.eup %211 }
 0x144   :  { %v74_v37 = vmul.f32 %v212_v34, %v55_v35 }
 0x146   :  { %v83_v41 = vadd.f32 %v182_v39, %v74_v37 }
 0x147   :  { %v214_v38 = vpop.eup %213 }
 0x148   :  { %v76_v40 = vmul.f32 %v214_v38, %v56_v36 }
 0x14a   :  { %v84_v42 = vadd.f32 %v182_v39, %v76_v40 }
 0x14c   :  { %v85_v43 = vpack.c.bf16 %v84_v42, %v83_v41 }
 0x14e   :  { %199 = vmatmul.mubr.msk.bf16.vlgmr.msra.gmra.mrb[0].mxu0 %vm27_vm0, %v85_v43 }
 0x221   :  { %v146_v45 = vpop.f32.mrb[0].mxu0 }
 0x222   :  { %v147_v46 = vadd.f32 %v183_v44, %v146_v45  ;;  %v200_v47 = vpop.f32.mrb[1].mxu0 }
 0x223   :  { %v149_v48 = vpop.f32.mrb[2].mxu0 }
 0x224   :  { %v189_v49 = vpack.c.bf16 %v147_v46, %v147_v46  ;;  %v150_v50 = vadd.f32 %v183_v44, %v149_v48  ;;  %v201_v51 = vpop.f32.mrb[3].mxu0 }
 0x226   :  { %162 = vst.msk [vmem:[%s296_s5] sm:$0xf] %vm161_vm6, %v189_v49  ;;  %v190_v52 = vpack.c.bf16 %v150_v50, %v150_v50  ;;  %164 = vrot.lane.b32.xlu0 %v189_v49, %s217_s9 }
 0x228   :  { %163 = vst.msk [vmem:[%s296_s5 + $0x4] sm:$0xf] %vm161_vm6, %v190_v52  ;;  %166 = vrot.lane.b32.xlu1 %v190_v52, %s217_s9 }
 0x298   :  { %v165_v53 = vpop.permute.xlu0 %164 }
 0x299   :  { %171 = vst.msk [vmem:[%s297_s6] sm:$0xf] %vm170_vm7, %v165_v53 }
 0x29a   :  { %v167_v54 = vpop.permute.xlu1 %166 }
 0x29b   :  { %172 = vst.msk [vmem:[%s297_s6 + $0x4] sm:$0xf] %vm170_vm7, %v167_v54 }

// kernel: transformer_forward.22
= control target key start
LH: loop header
LB: loop body
LE: loop exit
PB: predicated region body
PF: predicated region fallthrough
CT: control target
= control target key end

     0   :  { %vm31_vm0 = vcmask 261120   ;;  %v308_v14 = vmov 0.0   ;;  %vm309_vm1 = vmmov 0   ;;  %vm199_vm6 = vcmask 523264   ;;  %s409_s0 = inlined_call_operand.vmem [shape: f32[16,32], index: 0, kind: input, shape index: {}]   ;;  %s410_s3 = inlined_call_operand.vmem [shape: bf16[32,64], index: 3, kind: input, shape index: {}]   ;;  %s411_s5 = inlined_call_operand.vmem [shape: bf16[64,32], index: 5, kind: input, shape index: {}]   ;;  %s412_s1 = inlined_call_operand.vmem [shape: f32[1,32], index: 1, kind: input, shape index: {}]   ;;  %s413_s2 = inlined_call_operand.vmem [shape: f32[1,32], index: 2, kind: input, shape index: {}]   ;;  %s414_s4 = inlined_call_operand.vmem [shape: f32[1,64], index: 4, kind: input, shape index: {}]   ;;  %s415_s6 = inlined_call_operand.vmem [shape: f32[1,32], index: 6, kind: input, shape index: {}]   ;;  %s416_s7 = inlined_call_operand.vmem [shape: f32[16,32], index: 7, kind: output, shape index: {}]  }
   0x1   :  { %v353_v0 = vld [vmem:[%s409_s0] sm:$0xff]  ;;  %v358_v1 = vld [vmem:[%s409_s0 + $0x8] sm:$0xff]  ;;  %272 = vmatprep.subr.bf16.mxu0 %v308_v14  ;;  %276 = vmatprep.mubr.msk.bf16.mxu0 %vm309_vm1, %v308_v14  ;;  %v298_v46 = vld [vmem:[%s411_s5 + $0x10] sm:$0xff]  }
   0x2   :  { %v32_v2 = vsel %vm31_vm0, %v353_v0, 0.0  ;;  %v35_v3 = vsel %vm31_vm0, %v358_v1, 0.0  ;;  %v294_v15 = vld [vmem:[%s410_s3] sm:$0xff]   ;;  %280 = vmatprep.subr.bf16.mxu1 %v308_v14  ;;  %288 = vmatprep.mubr.msk.bf16.mxu1 %vm309_vm1, %v308_v14  ;;  %v295_v16 = vld [vmem:[%s410_s3 + $0x8] sm:$0xff]   ;;  %v299_v47 = vld [vmem:[%s411_s5 + $0x18] sm:$0xff]  }
   0x3   :  { %33 = vadd.xlane.f32.xlu0 %v32_v2  ;;  %273 = vmatpush3.bf16.msra.mxu0 %v294_v15  ;;  %v296_v17 = vld [vmem:[%s411_s5] sm:$0xff]   ;;  %v297_v18 = vld [vmem:[%s411_s5 + $0x8] sm:$0xff]  }
   0x4   :  { %274 = vmatprep.subr.bf16.mxu0 %v308_v14  ;;  %281 = vmatpush3.bf16.msra.mxu1 %v296_v17  ;;  %v252_v35 = vld [vmem:[%s412_s1] ss:$0 sm:$0xff] }
   0x5   :  { %282 = vmatprep.subr.bf16.mxu1 %v308_v14  ;;  %v253_v41 = vld [vmem:[%s413_s2] ss:$0 sm:$0xff] }
   0x6   :  { %v254_v48 = vld [vmem:[%s414_s4] ss:$0 sm:$0xff] }
   0x7   :  { %36 = vadd.xlane.f32.xlu0 %v35_v3  ;;  %275 = vmatpush3.bf16.msra.mxu0 %v295_v16  ;;  %v258_v58 = vld [vmem:[%s415_s6] ss:$0 sm:$0xff] }
   0x8   :  { %283 = vmatpush3.bf16.msra.mxu1 %v297_v18 }
   0x9   :  { %284 = vmatprep.subr.bf16.mxu1 %v308_v14 }
   0xc   :  { %285 = vmatpush3.bf16.msra.mxu1 %v298_v46 }
   0xd   :  { %286 = vmatprep.subr.bf16.mxu1 %v308_v14 }
  0x10   :  { %287 = vmatpush3.bf16.msra.mxu1 %v299_v47 }
  0x90   :  { %v34_v4 = vpop.xlane.xlu0 %33 }
  0x91   :  { %v39_v5 = vmul.f32 0.03125, %v34_v4 }
  0x93   :  { %v41_v6 = vsub.f32 %v353_v0, %v39_v5 }
  0x94   :  { %v37_v7 = vpop.xlane.xlu0 %36 }
  0x95   :  { %v40_v8 = vmul.f32 0.03125, %v37_v7  ;;  %v43_v9 = vmul.f32 %v41_v6, %v41_v6  ;;  %v59_v37 = vmul.f32 %v252_v35, %v41_v6 }
  0x97   :  { %v42_v10 = vsub.f32 %v358_v1, %v40_v8  ;;  %v45_v11 = vsel %vm31_vm0, %v43_v9, 0.0 }
  0x98   :  { %46 = vadd.xlane.f32.xlu1 %v45_v11 }
  0x99   :  { %v44_v12 = vmul.f32 %v42_v10, %v42_v10  ;;  %v60_v38 = vmul.f32 %v252_v35, %v42_v10 }
  0x9b   :  { %v48_v13 = vsel %vm31_vm0, %v44_v12, 0.0 }
  0x9c   :  { %49 = vadd.xlane.f32.xlu1 %v48_v13 }
 0x125   :  { %v47_v19 = vpop.xlane.xlu1 %46 }
 0x126   :  { %v51_v20 = vmul.f32 0.032258064, %v47_v19 }
 0x128   :  { %300 = vrsqrt.f32 %v51_v20  ;;  %vm63_vm2 = vcmp.eq.f32.partialorder %v51_v20, inf  ;;  %v66_v25 = vand.u32 2147483648, %v51_v20  ;;  %vm65_vm3 = vcmp.eq.f32.partialorder %v51_v20, 0.0 }
 0x129   :  { %v50_v21 = vpop.xlane.xlu1 %49 }
 0x12a   :  { %v52_v22 = vmul.f32 0.032258064, %v50_v21 }
 0x12c   :  { %302 = vrsqrt.f32 %v52_v22  ;;  %vm70_vm4 = vcmp.eq.f32.partialorder %v52_v22, inf  ;;  %v73_v31 = vand.u32 2147483648, %v52_v22  ;;  %vm72_vm5 = vcmp.eq.f32.partialorder %v52_v22, 0.0 }
 0x132   :  { %v301_v23 = vpop.eup %300 }
 0x133   :  { %v62_v24 = vmul.f32 %v301_v23, %v51_v20 }
 0x135   :  { %v64_v26 = vsel %vm63_vm2, %v51_v20, %v62_v24 }
 0x136   :  { %v303_v27 = vpop.eup %302  ;;  %v67_v28 = vsel %vm65_vm3, %v66_v25, %v64_v26 }
 0x137   :  { %v75_v29 = vadd.f32 1e-06, %v67_v28  ;;  %v69_v30 = vmul.f32 %v303_v27, %v52_v22 }
 0x139   :  { %304 = vrcp.f32 %v75_v29  ;;  %v71_v32 = vsel %vm70_vm4, %v52_v22, %v69_v30 }
 0x13a   :  { %v74_v33 = vsel %vm72_vm5, %v73_v31, %v71_v32 }
 0x13b   :  { %v76_v34 = vadd.f32 1e-06, %v74_v33 }
 0x13d   :  { %306 = vrcp.f32 %v76_v34 }
 0x143   :  { %v305_v36 = vpop.eup %304 }
 0x144   :  { %v78_v39 = vmul.f32 %v305_v36, %v59_v37 }
 0x146   :  { %v87_v43 = vadd.f32 %v253_v41, %v78_v39 }
 0x147   :  { %v307_v40 = vpop.eup %306 }
 0x148   :  { %v80_v42 = vmul.f32 %v307_v40, %v60_v38 }
 0x14a   :  { %v88_v44 = vadd.f32 %v253_v41, %v80_v42 }
 0x14c   :  { %v89_v45 = vpack.c.bf16 %v88_v44, %v87_v43 }
 0x14e   :  { %277 = vmatmul.mubr.msk.bf16.vlgmr.msra.gmra.mrb[0].mxu0 %vm31_vm0, %v89_v45 }
 0x221   :  { %v150_v49 = vpop.f32.mrb[0].mxu0 }
 0x222   :  { %v151_v50 = vadd.f32 %v254_v48, %v150_v49  ;;  %v278_v51 = vpop.f32.mrb[1].mxu0 }
 0x223   :  { %v153_v52 = vpop.f32.mrb[2].mxu0 }
 0x224   :  { %v154_v53 = vadd.f32 %v254_v48, %v153_v52  ;;  %v279_v54 = vpop.f32.mrb[3].mxu0  ;;  %v157_v55 = vmax.f32 %v151_v50, 0.0 }
 0x226   :  { %v158_v56 = vmax.f32 %v154_v53, 0.0 }
 0x228   :  { %v159_v57 = vpack.c.bf16 %v158_v56, %v157_v55 }
 0x22a   :  { %289 = vmatmul.mubr.msk.bf16.vlgmr.msra.gmra.mrb[0].mxu1 %vm199_vm6, %v159_v57 }
 0x2fd   :  { %v237_v59 = vpop.f32.mrb[0].mxu1 }
 0x2fe   :  { %v238_v60 = vadd.f32 %v258_v58, %v237_v59  ;;  %v290_v61 = vpop.f32.mrb[1].mxu1 }
 0x2ff   :  { %v240_v62 = vpop.f32.mrb[2].mxu1 }
 0x300   :  { %v244_v63 = vadd.f32 %v238_v60, %v353_v0  ;;  %v241_v2 = vadd.f32 %v258_v58, %v240_v62  ;;  %v291_v3 = vpop.f32.mrb[3].mxu1 }
 0x302   :  { %246 = vst.msk [vmem:[%s416_s7] sm:$0xff] %vm31_vm0, %v244_v63  ;;  %v245_v4 = vadd.f32 %v241_v2, %v358_v1 }
 0x304   :  { %247 = vst.msk [vmem:[%s416_s7 + $0x8] sm:$0xff] %vm31_vm0, %v245_v4 }

// kernel: transformer_forward.21
= control target key start
LH: loop header
LB: loop body
LE: loop exit
PB: predicated region body
PF: predicated region fallthrough
CT: control target
= control target key end

     0   :  { %s1155_s18 = smov 0   ;;  %s1157_s19 = smov 0   ;;  %s1272_s0 = inlined_call_operand.vmem [shape: bf16[2,8,32], index: 0, kind: input, shape index: {}]   ;;  %s1273_s1 = inlined_call_operand.vmem [shape: bf16[2,8,64], index: 1, kind: input, shape index: {}]   ;;  %s1274_s2 = inlined_call_operand.vmem [shape: bf16[32,32], index: 2, kind: input, shape index: {}]   ;;  %s1275_s3 = inlined_call_operand.vmem [shape: f32[1,32], index: 3, kind: input, shape index: {}]   ;;  %s1276_s4 = inlined_call_operand.vmem [shape: f32[2,8,32], index: 4, kind: input, shape index: {}]   ;;  %s1277_s5 = inlined_call_operand.vmem [shape: f32[2,8,32], index: 5, kind: output, shape index: {}]  }
   0x1   :  { %s1159_s20 = smov 0  }
   0x2 LB: > { %s27_s21 = sadd.s32 1, %s1107_s19  ;;  %p937_p0 = scmp.ge.s32.totalorder %s1111_s20, 1  ;;  %s1111_s20 = sphi %s1159_s20, %s15_s20   ;;  %s1107_s19 = sphi %s1157_s19, %s1279_s19   ;;  %s1103_s18 = sphi %s1155_s18, %s1278_s18  }
   0x3   : > { %p29_p1 = scmp.ge.s32.totalorder %s27_s21, 2  ;;  %p228_p2 = scmp.lt.s32.totalorder %s1111_s20, 3 }
   0x5   : > { %s1281_s21 = smov (%p29_p1, %s27_s21), 0  ;;  %p229_p3 = pnand %p937_p0, %p228_p2 }
   0x6   : > { %p271_p4 = scmp.lt.s32.totalorder (!%p229_p3), %s1103_s18, 1  ;;  %v1113_v0 = vmov (!%p229_p3), 0.0   ;;  %vm1114_vm0 = vmmov (!%p229_p3), 0   ;;  %vm299_vm1 = vcmask (!%p229_p3), 64512   ;;  %s1115_s29 = smov (!%p229_p3), 96   ;;  %vm366_vm2 = vcmask (!%p229_p3), 1043456  }
   0x7   : > { %232 = sbr.rel (%p229_p3) target bundleno = 1654 (0x676), region = 40  ;;  %977 = vmatprep.subr.bf16.mxu0 (!%p229_p3), %v1113_v0  ;;  %979 = vmatprep.mubr.msk.bf16.mxu0 (!%p229_p3), %vm1114_vm0, %v1113_v0  ;;  %s1116_s30 = smov (!%p229_p3), 120   ;;  %vm756_vm3 = vcmask (!%p229_p3), 130048   ;;  %vm758_vm4 = vcmask (!%p229_p3), 195584   ;;  %vm777_vm5 = vcmask (!%p229_p3), 261120  }
   0x8   : > { %983 = vmatprep.subr.bf16.mxu1 (!%p229_p3), %v1113_v0  ;;  %985 = vmatprep.mubr.msk.bf16.mxu1 (!%p229_p3), %vm1114_vm0, %v1113_v0  ;;  %s1117_s6 = smov (!%p229_p3), 112   ;;  %s1118_s7 = smov (!%p229_p3), 104  }
   0x9   : > { %s1119_s8 = smov (!%p229_p3), 88   ;;  %s1120_s9 = smov (!%p229_p3), 72  }
   0xa   : > { %s1121_s10 = smov (!%p229_p3), 80   ;;  %s1122_s13 = smov (!%p229_p3), 8  }
   0xb   : > { %s1123_s16 = smov (!%p229_p3), 16   ;;  %s1124_s17 = smov (!%p229_p3), 24  }
   0xe   : > { %s1283_s18 = smov (!%p271_p4, %s1103_s18), 1 }
   0xf   : > { %s938_s22 = sshll.u32 %s1283_s18, 2 }
  0x10   : > { %s281_s25 = scalar_lea.vmem %s1273_s1, %s938_s22  ;;  %s277_s28 = scalar_lea.vmem %s1272_s0, %s938_s22 }
  0x11   : > { %v298_v1 = vld [vmem:[%s281_s25] sm:$0xf]  ;;  %s940_s22 = sshll.u32 %s1283_s18, 3 }
  0x12   : > { %v304_v2 = vsel %vm299_vm1, %v298_v1, 0  ;;  %v297_v3 = vld [vmem:[%s277_s28] sm:$0xf]  ;;  %v1194_v9 = vcombine.low %v298_v1, %v298_v1  ;;  %s288_s25 = scalar_lea.vmem %s1276_s4, %s940_s22 }
  0x13   : > { %978 = vmatpush3.bf16.xpose.msra.mxu0 %v304_v2  ;;  %v945_v10 = vcombine.low %v297_v3, %v297_v3 }
  0x14   : > { %995 = vmatprep.subr.bf16.mxu0 %v1113_v0  ;;  %361 = vrot.lane.b32.xlu1 %v1194_v9, %s1115_s29 }
  0x18   : > { %415 = vrot.lane.b32.xlu1 %v1194_v9, %s1116_s30 }
  0x1a   : > { %980 = vmatmul.mubr.msk.bf16.vlgmr.msra.gmra.mrb[0].mxu0 %vm299_vm1, %v297_v3 }
  0x1b   : > { %997 = vmatprep.mubr.msk.bf16.mxu0 %vm1114_vm0, %v1113_v0 }
  0x1c   : > { %525 = vrot.lane.b32.xlu1 %v1194_v9, %s1117_s6 }
  0x20   : > { %523 = vrot.lane.b32.xlu1 %v945_v10, %s1117_s6 }
  0x24   : > { %635 = vrot.lane.b32.xlu1 %v1194_v9, %s1118_s7 }
  0x28   : > { %633 = vrot.lane.b32.xlu1 %v945_v10, %s1118_s7 }
  0x86   : > { %v362_v16 = vpop.permute.xlu1 %361 }
  0x87   : > { %v368_v17 = vsel %vm366_vm2, %v362_v16, 0 }
  0x88   : > { %984 = vmatpush3.bf16.msra.mxu1 %v368_v17 }
  0x89   : > { %989 = vmatprep.subr.bf16.mxu1 %v1113_v0 }
  0x8a   : > { %v416_v20 = vpop.permute.xlu1 %415 }
  0x8b   : > { %v421_v22 = vsel %vm299_vm1, %v416_v20, 0  ;;  %v1071_v20 = vld [vmem:[%s1274_s2] sm:$0xff]  }
  0x8e   : > { %v526_v24 = vpop.permute.xlu1 %525 }
  0x8f   : > { %v531_v27 = vsel %vm299_vm1, %v526_v24, 0 }
  0x92   : > { %v524_v26 = vpop.permute.xlu1 %523 }
  0x96   : > { %v636_v28 = vpop.permute.xlu1 %635 }
  0x97   : > { %v641_v29 = vsel %vm299_vm1, %v636_v28, 0 }
  0x9a   : > { %v634_v30 = vpop.permute.xlu1 %633 }
  0xed   : > { %v340_v4 = vpop.f32.mrb[0].mxu0 }
  0xee   : > { %v981_v5 = vpop.f32.mrb[1].mxu0  ;;  %v346_v6 = vsel %vm299_vm1, %v340_v4, -inf }
  0xef   : > { %347 = vmax.xlane.f32.xlu0 %v346_v6  ;;  %v343_v7 = vpop.f32.mrb[2].mxu0 }
  0xf0   : > { %v982_v8 = vpop.f32.mrb[3].mxu0 }
 0x17c   : > { %v348_v11 = vpop.xlane.xlu0 %347 }
 0x17d   : > { %v349_v12 = vsub.f32 %v340_v4, %v348_v11 }
 0x17f   : > { %v350_v13 = vmul.f32 1.442695, %v349_v12 }
 0x181   : > { %1073 = vpow2.f32 %v350_v13 }
 0x18b   : > { %v1074_v14 = vpop.eup %1073 }
 0x18c   : > { %v352_v15 = vsel %vm299_vm1, %v1074_v14, 0.0 }
 0x18d   : > { %353 = vadd.xlane.f32.xlu0 %v352_v15 }
 0x1a3   : > { %413 = vrot.lane.b32.xlu0 %v945_v10, %s1116_s30  ;;  %s295_s30 = scalar_lea.vmem %s1277_s5, %s940_s22 }
 0x21a   : > { %v354_v18 = vpop.xlane.xlu0 %353 }
 0x21b   : > { %1075 = vrcp.f32 %v354_v18 }
 0x21e   : > { %v414_v25 = vpop.permute.xlu0 %413 }
 0x225   : > { %v1076_v19 = vpop.eup %1075 }
 0x226   : > { %v356_v21 = vmul.f32 %v1076_v19, %v1074_v14 }
 0x228   : > { %v357_v23 = vpack.c.bf16 %v356_v21, %v356_v21 }
 0x22a   : > { %986 = vmatmul.mubr.msk.bf16.vlgmr.msra.gmra.mrb[0].mxu1 %vm299_vm1, %v357_v23 }
 0x22b   : > { %990 = vmatpush3.bf16.xpose.msra.mxu1 %v421_v22  ;;  %991 = vmatprep.mubr.msk.bf16.mxu1 %vm1114_vm0, %v1113_v0 }
 0x22c   : > { %1001 = vmatprep.subr.bf16.mxu1 %v1113_v0 }
 0x232   : > { %992 = vmatmul.mubr.msk.bf16.vlgmr.msra.gmra.mrb[4].mxu1 %vm299_vm1, %v414_v25  ;;  %v1072_v25 = vld [vmem:[%s1274_s2 + $0x8] sm:$0xff]  }
 0x233   : > { %1002 = vmatpush3.bf16.xpose.msra.mxu1 %v531_v27  ;;  %1003 = vmatprep.mubr.msk.bf16.mxu1 %vm1114_vm0, %v1113_v0 }
 0x234   : > { %1013 = vmatprep.subr.bf16.mxu1 %v1113_v0 }
 0x23a   : > { %1004 = vmatmul.mubr.msk.bf16.vlgmr.msra.gmra.mrb[8].mxu1 %vm299_vm1, %v524_v26 }
 0x23b   : > { %1014 = vmatpush3.bf16.xpose.msra.mxu1 %v641_v29  ;;  %1015 = vmatprep.mubr.msk.bf16.mxu1 %vm1114_vm0, %v1113_v0 }
 0x23c   : > { %1025 = vmatprep.subr.bf16.mxu1 %v1113_v0 }
 0x242   : > { %1016 = vmatmul.mubr.msk.bf16.vlgmr.msra.gmra.mrb[12].mxu1 %vm299_vm1, %v634_v30 }
 0x243   : > { %1029 = vmatprep.mubr.msk.bf16.mxu1 %vm1114_vm0, %v1113_v0  ;;  %1026 = vmatpush3.bf16.msra.mxu1 %v1071_v20 }
 0x244   : > { %1027 = vmatprep.subr.bf16.mxu1 %v1113_v0 }
 0x247   : > { %1028 = vmatpush3.bf16.msra.mxu1 %v1072_v25 }
 0x2fd   : > { %v1221_v31 = vpop.f32.mrb[0].mxu1 }
 0x2fe   : > { %v987_v32 = vpop.f32.mrb[1].mxu1 }
 0x2ff   : > { %v407_v33 = vpop.f32.mrb[2].mxu1 }
 0x300   : > { %v988_v34 = vpop.f32.mrb[3].mxu1 }
 0x305   : > { %v457_v35 = vpop.f32.mrb[4].mxu1 }
 0x306   : > { %v993_v36 = vpop.f32.mrb[5].mxu1  ;;  %v463_v37 = vsel %vm299_vm1, %v457_v35, -inf }
 0x307   : > { %464 = vmax.xlane.f32.xlu1 %v463_v37  ;;  %v460_v38 = vpop.f32.mrb[6].mxu1 }
 0x308   : > { %v994_v39 = vpop.f32.mrb[7].mxu1 }
 0x30d   : > { %v567_v40 = vpop.f32.mrb[8].mxu1 }
 0x30e   : > { %v1005_v41 = vpop.f32.mrb[9].mxu1  ;;  %v573_v42 = vsel %vm299_vm1, %v567_v40, -inf }
 0x30f   : > { %574 = vmax.xlane.f32.xlu0 %v573_v42  ;;  %v570_v43 = vpop.f32.mrb[10].mxu1  ;;  %v821_v41 = vld [vmem:[%s288_s25] sm:$0xff] }
 0x310   : > { %v1006_v44 = vpop.f32.mrb[11].mxu1  ;;  %v955_v43 = vld [vmem:[%s1275_s3] ss:$0 sm:$0xff] }
 0x315   : > { %v677_v45 = vpop.f32.mrb[12].mxu1 }
 0x316   : > { %v1017_v46 = vpop.f32.mrb[13].mxu1  ;;  %v683_v47 = vsel %vm299_vm1, %v677_v45, -inf }
 0x317   : > { %684 = vmax.xlane.f32.xlu1 %v683_v47  ;;  %v680_v48 = vpop.f32.mrb[14].mxu1 }
 0x318   : > { %v1018_v49 = vpop.f32.mrb[15].mxu1 }
 0x328   : > { %475 = vrot.lane.b32.xlu1 %v1194_v9, %s1119_s8 }
 0x394   : > { %v465_v50 = vpop.xlane.xlu1 %464 }
 0x395   : > { %v466_v51 = vsub.f32 %v457_v35, %v465_v50 }
 0x397   : > { %v467_v52 = vmul.f32 1.442695, %v466_v51 }
 0x399   : > { %1077 = vpow2.f32 %v467_v52 }
 0x39c   : > { %v575_v53 = vpop.xlane.xlu0 %574 }
 0x39d   : > { %v576_v54 = vsub.f32 %v567_v40, %v575_v53 }
 0x39f   : > { %v577_v55 = vmul.f32 1.442695, %v576_v54 }
 0x3a1   : > { %1079 = vpow2.f32 %v577_v55 }
 0x3a3   : > { %v1078_v56 = vpop.eup %1077 }
 0x3a4   : > { %v685_v57 = vpop.xlane.xlu1 %684  ;;  %v469_v58 = vsel %vm299_vm1, %v1078_v56, 0.0 }
 0x3a5   : > { %v686_v59 = vsub.f32 %v677_v45, %v685_v57  ;;  %470 = vadd.xlane.f32.xlu0 %v469_v58 }
 0x3a7   : > { %v687_v60 = vmul.f32 1.442695, %v686_v59 }
 0x3a8   : > { %v476_v61 = vpop.permute.xlu1 %475 }
 0x3a9   : > { %1081 = vpow2.f32 %v687_v60  ;;  %v481_v62 = vsel %vm366_vm2, %v476_v61, 0 }
 0x3aa   : > { %996 = vmatpush3.bf16.msra.mxu0 %v481_v62 }
 0x3ab   : > { %v1080_v63 = vpop.eup %1079  ;;  %1007 = vmatprep.subr.bf16.mxu0 %v1113_v0 }
 0x3ac   : > { %v579_v1 = vsel %vm299_vm1, %v1080_v63, 0.0 }
 0x3ad   : > { %580 = vadd.xlane.f32.xlu1 %v579_v1 }
 0x3b3   : > { %v1082_v2 = vpop.eup %1081 }
 0x3b4   : > { %v689_v3 = vsel %vm299_vm1, %v1082_v2, 0.0 }
 0x3b5   : > { %690 = vadd.xlane.f32.xlu0 %v689_v3 }
 0x3be   : > { %695 = vrot.lane.b32.xlu1 %v1194_v9, %s1120_s9 }
 0x3cb   : > { %585 = vrot.lane.b32.xlu0 %v1194_v9, %s1121_s10 }
 0x432   : > { %v471_v4 = vpop.xlane.xlu0 %470 }
 0x433   : > { %1083 = vrcp.f32 %v471_v4 }
 0x43a   : > { %v581_v5 = vpop.xlane.xlu1 %580 }
 0x43b   : > { %1085 = vrcp.f32 %v581_v5 }
 0x43d   : > { %v1084_v6 = vpop.eup %1083 }
 0x43e   : > { %v473_v7 = vmul.f32 %v1084_v6, %v1078_v56  ;;  %v696_v14 = vpop.permute.xlu1 %695 }
 0x43f   : > { %v701_v16 = vsel %vm366_vm2, %v696_v14, 0 }
 0x440   : > { %v474_v8 = vpack.c.bf16 %v473_v7, %v473_v7 }
 0x442   : > { %v691_v10 = vpop.xlane.xlu0 %690  ;;  %998 = vmatmul.mubr.msk.bf16.vlgmr.msra.gmra.mrb[4].mxu0 %vm299_vm1, %v474_v8 }
 0x443   : > { %1087 = vrcp.f32 %v691_v10  ;;  %1009 = vmatprep.mubr.msk.bf16.mxu0 %vm1114_vm0, %v1113_v0 }
 0x445   : > { %v1086_v11 = vpop.eup %1085 }
 0x446   : > { %v583_v12 = vmul.f32 %v1086_v11, %v1080_v63  ;;  %v586_v13 = vpop.permute.xlu0 %585 }
 0x447   : > { %v591_v9 = vsel %vm366_vm2, %v586_v13, 0 }
 0x448   : > { %1008 = vmatpush3.bf16.msra.mxu0 %v591_v9  ;;  %v584_v15 = vpack.c.bf16 %v583_v12, %v583_v12 }
 0x449   : > { %1019 = vmatprep.subr.bf16.mxu0 %v1113_v0 }
 0x44b   : > { %1010 = vmatmul.mubr.msk.bf16.vlgmr.msra.gmra.mrb[8].mxu0 %vm299_vm1, %v584_v15 }
 0x44c   : > { %1020 = vmatpush3.bf16.msra.mxu0 %v701_v16  ;;  %1021 = vmatprep.mubr.msk.bf16.mxu0 %vm1114_vm0, %v1113_v0 }
 0x44d   : > { %v1088_v17 = vpop.eup %1087 }
 0x44e   : > { %v693_v18 = vmul.f32 %v1088_v17, %v1082_v2 }
 0x450   : > { %v694_v19 = vpack.c.bf16 %v693_v18, %v693_v18 }
 0x453   : > { %1022 = vmatmul.mubr.msk.bf16.vlgmr.msra.gmra.mrb[12].mxu0 %vm299_vm1, %v694_v19 }
 0x515   : > { %v517_v21 = vpop.f32.mrb[4].mxu0 }
 0x516   : > { %744 = vrot.lane.b32.xlu1 %v517_v21, %s1122_s13  ;;  %v999_v22 = vpop.f32.mrb[5].mxu0 }
 0x517   : > { %v520_v23 = vpop.f32.mrb[6].mxu0 }
 0x518   : > { %v1000_v24 = vpop.f32.mrb[7].mxu0 }
 0x51e   : > { %v627_v26 = vpop.f32.mrb[8].mxu0 }
 0x51f   : > { %748 = vrot.lane.b32.xlu0 %v627_v26, %s1123_s16  ;;  %v1011_v27 = vpop.f32.mrb[9].mxu0 }
 0x520   : > { %v630_v28 = vpop.f32.mrb[10].mxu0 }
 0x521   : > { %v1012_v29 = vpop.f32.mrb[11].mxu0 }
 0x526   : > { %v737_v30 = vpop.f32.mrb[12].mxu0 }
 0x527   : > { %752 = vrot.lane.b32.xlu1 %v737_v30, %s1124_s17  ;;  %v1023_v0 = vpop.f32.mrb[13].mxu0 }
 0x528   : > { %v740_v32 = vpop.f32.mrb[14].mxu0 }
 0x529   : > { %v1024_v33 = vpop.f32.mrb[15].mxu0 }
 0x588   : > { %v745_v34 = vpop.permute.xlu1 %744 }
 0x589   : > { %v755_v36 = vsel %vm299_vm1, %v1221_v31, %v745_v34 }
 0x591   : > { %v749_v35 = vpop.permute.xlu0 %748 }
 0x592   : > { %v757_v37 = vsel %vm756_vm3, %v755_v36, %v749_v35 }
 0x599   : > { %v753_v38 = vpop.permute.xlu1 %752 }
 0x59a   : > { %v759_v39 = vsel %vm758_vm4, %v757_v37, %v753_v38 }
 0x59b   : > { %v760_v40 = vpack.c.bf16 %v759_v39, %v759_v39 }
 0x59d   : > { %1030 = vmatmul.mubr.msk.bf16.vlgmr.msra.gmra.mrb[16].mxu1 %vm777_vm5, %v760_v40 }
 0x670   : > { %v815_v42 = vpop.f32.mrb[16].mxu1 }
 0x671   : > { %v822_v44 = vadd.f32 %v821_v41, %v815_v42  ;;  %v1031_v45 = vpop.f32.mrb[17].mxu1 }
 0x672   : > { %v818_v31 = vpop.f32.mrb[18].mxu1 }
 0x673   : > { %v830_v46 = vadd.f32 %v955_v43, %v822_v44  ;;  %v1032_v47 = vpop.f32.mrb[19].mxu1 }
 0x675   : > { %831 = vst.msk [vmem:[%s295_s30] sm:$0xff] %vm777_vm5, %v830_v46 }
 0x676 PF: > { %s15_s20 = sadd.s32 1, %s1111_s20   ;;  %s1278_s18 = smov %s1107_s19 }
 0x677   : > { %p12_p5 = scmp.ge.s32.totalorder %s15_s20, 4   ;;  %s1279_s19 = smov %s1281_s21 }
 0x679   :  { %14 = sbr.rel (!%p12_p5) target bundleno = 2 (0x2), region = 76 }

// kernel: transformer_forward.26
= control target key start
LH: loop header
LB: loop body
LE: loop exit
PB: predicated region body
PF: predicated region fallthrough
CT: control target
= control target key end

     0   :  { %vm18_vm0 = vcmask 261120   ;;  %s136_s0 = inlined_call_operand.vmem [shape: f32[16,32], index: 0, kind: input, shape index: {}]   ;;  %s137_s1 = inlined_call_operand.vmem [shape: f32[1,32], index: 1, kind: input, shape index: {}]   ;;  %s138_s2 = inlined_call_operand.vmem [shape: f32[1,32], index: 2, kind: input, shape index: {}]   ;;  %s139_s3 = inlined_call_operand.vmem [shape: f32[16,32], index: 3, kind: output, shape index: {}]  }
   0x1   :  { %v14_v0 = vld [vmem:[%s136_s0] sm:$0xff]  ;;  %v15_v1 = vld [vmem:[%s136_s0 + $0x8] sm:$0xff] }
   0x2   :  { %v19_v2 = vsel %vm18_vm0, %v14_v0, 0.0  ;;  %v22_v3 = vsel %vm18_vm0, %v15_v1, 0.0  ;;  %v82_v30 = vld [vmem:[%s137_s1] ss:$0 sm:$0xff] }
   0x3   :  { %20 = vadd.xlane.f32.xlu0 %v19_v2  ;;  %v83_v33 = vld [vmem:[%s138_s2] ss:$0 sm:$0xff] }
   0x7   :  { %23 = vadd.xlane.f32.xlu0 %v22_v3 }
  0x90   :  { %v21_v4 = vpop.xlane.xlu0 %20 }
  0x91   :  { %v26_v5 = vmul.f32 0.03125, %v21_v4 }
  0x93   :  { %v28_v6 = vsub.f32 %v14_v0, %v26_v5 }
  0x94   :  { %v24_v7 = vpop.xlane.xlu0 %23 }
  0x95   :  { %v27_v8 = vmul.f32 0.03125, %v24_v7  ;;  %v30_v9 = vmul.f32 %v28_v6, %v28_v6  ;;  %v46_v31 = vmul.f32 %v82_v30, %v28_v6 }
  0x97   :  { %v29_v10 = vsub.f32 %v15_v1, %v27_v8  ;;  %v32_v11 = vsel %vm18_vm0, %v30_v9, 0.0 }
  0x98   :  { %33 = vadd.xlane.f32.xlu1 %v32_v11 }
  0x99   :  { %v31_v12 = vmul.f32 %v29_v10, %v29_v10  ;;  %v47_v35 = vmul.f32 %v82_v30, %v29_v10 }
  0x9b   :  { %v35_v13 = vsel %vm18_vm0, %v31_v12, 0.0 }
  0x9c   :  { %36 = vadd.xlane.f32.xlu1 %v35_v13 }
 0x125   :  { %v34_v14 = vpop.xlane.xlu1 %33 }
 0x126   :  { %v38_v15 = vmul.f32 0.032258064, %v34_v14 }
 0x128   :  { %84 = vrsqrt.f32 %v38_v15  ;;  %vm50_vm1 = vcmp.eq.f32.partialorder %v38_v15, inf  ;;  %v53_v20 = vand.u32 2147483648, %v38_v15  ;;  %vm52_vm2 = vcmp.eq.f32.partialorder %v38_v15, 0.0 }
 0x129   :  { %v37_v16 = vpop.xlane.xlu1 %36 }
 0x12a   :  { %v39_v17 = vmul.f32 0.032258064, %v37_v16 }
 0x12c   :  { %86 = vrsqrt.f32 %v39_v17  ;;  %vm57_vm3 = vcmp.eq.f32.partialorder %v39_v17, inf  ;;  %v60_v26 = vand.u32 2147483648, %v39_v17  ;;  %vm59_vm4 = vcmp.eq.f32.partialorder %v39_v17, 0.0 }
 0x132   :  { %v85_v18 = vpop.eup %84 }
 0x133   :  { %v49_v19 = vmul.f32 %v85_v18, %v38_v15 }
 0x135   :  { %v51_v21 = vsel %vm50_vm1, %v38_v15, %v49_v19 }
 0x136   :  { %v87_v22 = vpop.eup %86  ;;  %v54_v23 = vsel %vm52_vm2, %v53_v20, %v51_v21 }
 0x137   :  { %v62_v24 = vadd.f32 1e-06, %v54_v23  ;;  %v56_v25 = vmul.f32 %v87_v22, %v39_v17 }
 0x139   :  { %88 = vrcp.f32 %v62_v24  ;;  %v58_v27 = vsel %vm57_vm3, %v39_v17, %v56_v25 }
 0x13a   :  { %v61_v28 = vsel %vm59_vm4, %v60_v26, %v58_v27 }
 0x13b   :  { %v63_v29 = vadd.f32 1e-06, %v61_v28 }
 0x13d   :  { %90 = vrcp.f32 %v63_v29 }
 0x143   :  { %v89_v32 = vpop.eup %88 }
 0x144   :  { %v65_v34 = vmul.f32 %v89_v32, %v46_v31 }
 0x146   :  { %v74_v36 = vadd.f32 %v83_v33, %v65_v34 }
 0x147   :  { %v91_v37 = vpop.eup %90 }
 0x148   :  { %76 = vst.msk [vmem:[%s139_s3] sm:$0xff] %vm18_vm0, %v74_v36  ;;  %v67_v38 = vmul.f32 %v91_v37, %v47_v35 }
 0x14a   :  { %v75_v39 = vadd.f32 %v83_v33, %v67_v38 }
 0x14c   :  { %77 = vst.msk [vmem:[%s139_s3 + $0x8] sm:$0xff] %vm18_vm0, %v75_v39 }

// kernel: transformer_forward.30
= control target key start
LH: loop header
LB: loop body
LE: loop exit
PB: predicated region body
PF: predicated region fallthrough
CT: control target
= control target key end

     0   :  { %v124_v0 = vmov 0.0   ;;  %vm125_vm0 = vmmov 0   ;;  %vm41_vm1 = vcmask 261120   ;;  %vm94_vm2 = vcmask 519168   ;;  %s167_s1 = inlined_call_operand.vmem [shape: bf16[32,64], index: 1, kind: input, shape index: {}]   ;;  %s168_s0 = inlined_call_operand.vmem [shape: f32[16,32], index: 0, kind: input, shape index: {}]   ;;  %s169_s2 = inlined_call_operand.vmem [shape: f32[1,64], index: 2, kind: input, shape index: {}]   ;;  %s170_s3 = inlined_call_operand.vmem [shape: bf16[16,64], index: 3, kind: output, shape index: {}]  }
   0x1   :  { %112 = vmatprep.subr.bf16.mxu0 %v124_v0  ;;  %v122_v1 = vld [vmem:[%s167_s1] sm:$0xff]   ;;  %116 = vmatprep.mubr.msk.bf16.mxu0 %vm125_vm0, %v124_v0  ;;  %v123_v2 = vld [vmem:[%s167_s1 + $0x8] sm:$0xff]  }
   0x2   :  { %113 = vmatpush3.bf16.msra.mxu0 %v122_v1  ;;  %v15_v3 = vld [vmem:[%s168_s0] sm:$0xff]  ;;  %v16_v4 = vld [vmem:[%s168_s0 + $0x8] sm:$0xff] }
   0x3   :  { %114 = vmatprep.subr.bf16.mxu0 %v124_v0  ;;  %v17_v5 = vpack.c.bf16 %v16_v4, %v15_v3  ;;  %v101_v6 = vld [vmem:[%s169_s2] ss:$0 sm:$0xff] }
   0x6   :  { %115 = vmatpush3.bf16.msra.mxu0 %v123_v2 }
   0x9   :  { %117 = vmatmul.mubr.msk.bf16.vlgmr.msra.gmra.mrb[0].mxu0 %vm41_vm1, %v17_v5 }
  0xdc   :  { %v79_v7 = vpop.f32.mrb[0].mxu0 }
  0xdd   :  { %v80_v8 = vadd.f32 %v101_v6, %v79_v7  ;;  %v118_v9 = vpop.f32.mrb[1].mxu0 }
  0xde   :  { %v82_v10 = vpop.f32.mrb[2].mxu0 }
  0xdf   :  { %v107_v11 = vpack.c.bf16 %v80_v8, %v80_v8  ;;  %v83_v12 = vadd.f32 %v101_v6, %v82_v10  ;;  %v119_v13 = vpop.f32.mrb[3].mxu0 }
  0xe1   :  { %95 = vst.msk [vmem:[%s170_s3] sm:$0xf] %vm94_vm2, %v107_v11  ;;  %v108_v14 = vpack.c.bf16 %v83_v12, %v83_v12 }
  0xe3   :  { %96 = vst.msk [vmem:[%s170_s3 + $0x4] sm:$0xf] %vm94_vm2, %v108_v14 }

// kernel: transformer_forward.29
= control target key start
LH: loop header
LB: loop body
LE: loop exit
PB: predicated region body
PF: predicated region fallthrough
CT: control target
= control target key end

     0   :  { %vm25_vm0 = vcmask 261120   ;;  %v199_v14 = vmov 0.0   ;;  %vm200_vm1 = vmmov 0   ;;  %vm159_vm6 = vcmask 257024   ;;  %s263_s0 = inlined_call_operand.vmem [shape: f32[16,32], index: 0, kind: input, shape index: {}]   ;;  %s264_s3 = inlined_call_operand.vmem [shape: bf16[32,32], index: 3, kind: input, shape index: {}]   ;;  %s265_s1 = inlined_call_operand.vmem [shape: f32[1,32], index: 1, kind: input, shape index: {}]   ;;  %s266_s2 = inlined_call_operand.vmem [shape: f32[1,32], index: 2, kind: input, shape index: {}]   ;;  %s267_s4 = inlined_call_operand.vmem [shape: f32[1,32], index: 4, kind: input, shape index: {}]   ;;  %s268_s5 = inlined_call_operand.vmem [shape: bf16[16,32], index: 5, kind: output, shape index: {}]  }
   0x1   :  { %v21_v0 = vld [vmem:[%s263_s0] sm:$0xff]  ;;  %v22_v1 = vld [vmem:[%s263_s0 + $0x8] sm:$0xff]  ;;  %179 = vmatprep.subr.bf16.mxu0 %v199_v14  ;;  %183 = vmatprep.mubr.msk.bf16.mxu0 %vm200_vm1, %v199_v14 }
   0x2   :  { %v26_v2 = vsel %vm25_vm0, %v21_v0, 0.0  ;;  %v29_v3 = vsel %vm25_vm0, %v22_v1, 0.0  ;;  %v189_v15 = vld [vmem:[%s264_s3] sm:$0xff]   ;;  %v190_v16 = vld [vmem:[%s264_s3 + $0x8] sm:$0xff]  }
   0x3   :  { %27 = vadd.xlane.f32.xlu0 %v26_v2  ;;  %180 = vmatpush3.bf16.msra.mxu0 %v189_v15  ;;  %v166_v33 = vld [vmem:[%s265_s1] ss:$0 sm:$0xff] }
   0x4   :  { %181 = vmatprep.subr.bf16.mxu0 %v199_v14  ;;  %v167_v39 = vld [vmem:[%s266_s2] ss:$0 sm:$0xff] }
   0x5   :  { %v168_v44 = vld [vmem:[%s267_s4] ss:$0 sm:$0xff] }
   0x7   :  { %30 = vadd.xlane.f32.xlu0 %v29_v3  ;;  %182 = vmatpush3.bf16.msra.mxu0 %v190_v16 }
  0x90   :  { %v28_v4 = vpop.xlane.xlu0 %27 }
  0x91   :  { %v33_v5 = vmul.f32 0.03125, %v28_v4 }
  0x93   :  { %v35_v6 = vsub.f32 %v21_v0, %v33_v5 }
  0x94   :  { %v31_v7 = vpop.xlane.xlu0 %30 }
  0x95   :  { %v34_v8 = vmul.f32 0.03125, %v31_v7  ;;  %v37_v9 = vmul.f32 %v35_v6, %v35_v6  ;;  %v53_v35 = vmul.f32 %v166_v33, %v35_v6 }
  0x97   :  { %v36_v10 = vsub.f32 %v22_v1, %v34_v8  ;;  %v39_v11 = vsel %vm25_vm0, %v37_v9, 0.0 }
  0x98   :  { %40 = vadd.xlane.f32.xlu1 %v39_v11 }
  0x99   :  { %v38_v12 = vmul.f32 %v36_v10, %v36_v10  ;;  %v54_v36 = vmul.f32 %v166_v33, %v36_v10 }
  0x9b   :  { %v42_v13 = vsel %vm25_vm0, %v38_v12, 0.0 }
  0x9c   :  { %43 = vadd.xlane.f32.xlu1 %v42_v13 }
 0x125   :  { %v41_v17 = vpop.xlane.xlu1 %40 }
 0x126   :  { %v45_v18 = vmul.f32 0.032258064, %v41_v17 }
 0x128   :  { %191 = vrsqrt.f32 %v45_v18  ;;  %vm57_vm2 = vcmp.eq.f32.partialorder %v45_v18, inf  ;;  %v60_v23 = vand.u32 2147483648, %v45_v18  ;;  %vm59_vm3 = vcmp.eq.f32.partialorder %v45_v18, 0.0 }
 0x129   :  { %v44_v19 = vpop.xlane.xlu1 %43 }
 0x12a   :  { %v46_v20 = vmul.f32 0.032258064, %v44_v19 }
 0x12c   :  { %193 = vrsqrt.f32 %v46_v20  ;;  %vm64_vm4 = vcmp.eq.f32.partialorder %v46_v20, inf  ;;  %v67_v29 = vand.u32 2147483648, %v46_v20  ;;  %vm66_vm5 = vcmp.eq.f32.partialorder %v46_v20, 0.0 }
 0x132   :  { %v192_v21 = vpop.eup %191 }
 0x133   :  { %v56_v22 = vmul.f32 %v192_v21, %v45_v18 }
 0x135   :  { %v58_v24 = vsel %vm57_vm2, %v45_v18, %v56_v22 }
 0x136   :  { %v194_v25 = vpop.eup %193  ;;  %v61_v26 = vsel %vm59_vm3, %v60_v23, %v58_v24 }
 0x137   :  { %v69_v27 = vadd.f32 1e-06, %v61_v26  ;;  %v63_v28 = vmul.f32 %v194_v25, %v46_v20 }
 0x139   :  { %195 = vrcp.f32 %v69_v27  ;;  %v65_v30 = vsel %vm64_vm4, %v46_v20, %v63_v28 }
 0x13a   :  { %v68_v31 = vsel %vm66_vm5, %v67_v29, %v65_v30 }
 0x13b   :  { %v70_v32 = vadd.f32 1e-06, %v68_v31 }
 0x13d   :  { %197 = vrcp.f32 %v70_v32 }
 0x143   :  { %v196_v34 = vpop.eup %195 }
 0x144   :  { %v72_v37 = vmul.f32 %v196_v34, %v53_v35 }
 0x146   :  { %v81_v41 = vadd.f32 %v167_v39, %v72_v37 }
 0x147   :  { %v198_v38 = vpop.eup %197 }
 0x148   :  { %v74_v40 = vmul.f32 %v198_v38, %v54_v36 }
 0x14a   :  { %v82_v42 = vadd.f32 %v167_v39, %v74_v40 }
 0x14c   :  { %v83_v43 = vpack.c.bf16 %v82_v42, %v81_v41 }
 0x14e   :  { %184 = vmatmul.mubr.msk.bf16.vlgmr.msra.gmra.mrb[0].mxu0 %vm25_vm0, %v83_v43 }
 0x221   :  { %v144_v45 = vpop.f32.mrb[0].mxu0 }
 0x222   :  { %v145_v46 = vadd.f32 %v168_v44, %v144_v45  ;;  %v185_v47 = vpop.f32.mrb[1].mxu0 }
 0x223   :  { %v147_v48 = vpop.f32.mrb[2].mxu0 }
 0x224   :  { %v174_v49 = vpack.c.bf16 %v145_v46, %v145_v46  ;;  %v148_v50 = vadd.f32 %v168_v44, %v147_v48  ;;  %v186_v51 = vpop.f32.mrb[3].mxu0 }
 0x226   :  { %160 = vst.msk [vmem:[%s268_s5] sm:$0xf] %vm159_vm6, %v174_v49  ;;  %v175_v52 = vpack.c.bf16 %v148_v50, %v148_v50 }
 0x228   :  { %161 = vst.msk [vmem:[%s268_s5 + $0x4] sm:$0xf] %vm159_vm6, %v175_v52 }

// kernel: transformer_forward.39
= control target key start
LH: loop header
LB: loop body
LE: loop exit
PB: predicated region body
PF: predicated region fallthrough
CT: control target
= control target key end

     0   :  { %vm19_vm0 = vcmask 261120   ;;  %s185_s0 = inlined_call_operand.vmem [shape: f32[16,32], index: 0, kind: input, shape index: {}]   ;;  %s186_s1 = inlined_call_operand.vmem [shape: f32[1,32], index: 1, kind: input, shape index: {}]   ;;  %s187_s2 = inlined_call_operand.vmem [shape: f32[1,32], index: 2, kind: input, shape index: {}]   ;;  %s188_s3 = inlined_call_operand.hbm [shape: f32[16,32], index: 3, kind: output, shape index: {}]  }
   0x1   :  { %v15_v0 = vld [vmem:[%s185_s0] sm:$0xff]  ;;  %v16_v1 = vld [vmem:[%s185_s0 + $0x8] sm:$0xff] }
   0x2   :  { %v20_v2 = vsel %vm19_vm0, %v15_v0, 0.0 }
   0x3   :  { %8 = vsyncpa [#allocation3], 0  ;;  %21 = vadd.xlane.f32.xlu0 %v20_v2  ;;  %v23_v3 = vsel %vm19_vm0, %v16_v1, 0.0  ;;  %v95_v30 = vld [vmem:[%s186_s1] ss:$0 sm:$0xff]  ;;  %s132_s19 = smov [#allocation2]  }
   0x4   :  { %v96_v33 = vld [vmem:[%s187_s2] ss:$0 sm:$0xff]  ;;  %s84_s20 = sshll.u32 %s132_s19, 4  ;;  %s85_s20 = int_to_ptr.vmem [resolvable:$true] %s84_s20 }
   0x5   :  { %s108_s1 = scalar_lea.vmem %s85_s20, 256  ;;  %p113_p1 = scmp.lt.s32.totalorder %s85_s20, %s85_s20 }
   0x6   :  { %p109_p0 = scmp.ne.s32.totalorder %s85_s20, %s108_s1  ;;  %p114_p2 = scmp.lt.s32.totalorder %s108_s1, %s108_s1 }
   0x7   :  { %24 = vadd.xlane.f32.xlu0 %v23_v3 }
   0x8   :  { %p115_p3 = por %p114_p2, %p113_p1 }
   0xa   :  { %p116_p4 = pnand %p115_p3, %p109_p0 }
  0x90   :  { %v22_v4 = vpop.xlane.xlu0 %21 }
  0x91   :  { %v27_v5 = vmul.f32 0.03125, %v22_v4 }
  0x93   :  { %v29_v6 = vsub.f32 %v15_v0, %v27_v5 }
  0x94   :  { %v25_v7 = vpop.xlane.xlu0 %24 }
  0x95   :  { %v28_v8 = vmul.f32 0.03125, %v25_v7  ;;  %v31_v9 = vmul.f32 %v29_v6, %v29_v6  ;;  %v47_v31 = vmul.f32 %v95_v30, %v29_v6 }
  0x97   :  { %v30_v10 = vsub.f32 %v16_v1, %v28_v8  ;;  %v33_v11 = vsel %vm19_vm0, %v31_v9, 0.0 }
  0x98   :  { %34 = vadd.xlane.f32.xlu1 %v33_v11 }
  0x99   :  { %v32_v12 = vmul.f32 %v30_v10, %v30_v10  ;;  %v48_v35 = vmul.f32 %v95_v30, %v30_v10 }
  0x9b   :  { %v36_v13 = vsel %vm19_vm0, %v32_v12, 0.0 }
  0x9c   :  { %37 = vadd.xlane.f32.xlu1 %v36_v13 }
 0x125   :  { %v35_v14 = vpop.xlane.xlu1 %34 }
 0x126   :  { %v39_v15 = vmul.f32 0.032258064, %v35_v14 }
 0x128   :  { %100 = vrsqrt.f32 %v39_v15  ;;  %vm51_vm1 = vcmp.eq.f32.partialorder %v39_v15, inf  ;;  %v54_v20 = vand.u32 2147483648, %v39_v15  ;;  %vm53_vm2 = vcmp.eq.f32.partialorder %v39_v15, 0.0 }
 0x129   :  { %v38_v16 = vpop.xlane.xlu1 %37 }
 0x12a   :  { %v40_v17 = vmul.f32 0.032258064, %v38_v16 }
 0x12c   :  { %102 = vrsqrt.f32 %v40_v17  ;;  %vm58_vm3 = vcmp.eq.f32.partialorder %v40_v17, inf  ;;  %v61_v26 = vand.u32 2147483648, %v40_v17  ;;  %vm60_vm4 = vcmp.eq.f32.partialorder %v40_v17, 0.0 }
 0x132   :  { %v101_v18 = vpop.eup %100 }
 0x133   :  { %v50_v19 = vmul.f32 %v101_v18, %v39_v15 }
 0x135   :  { %v52_v21 = vsel %vm51_vm1, %v39_v15, %v50_v19 }
 0x136   :  { %v103_v22 = vpop.eup %102  ;;  %v55_v23 = vsel %vm53_vm2, %v54_v20, %v52_v21 }
 0x137   :  { %v63_v24 = vadd.f32 1e-06, %v55_v23  ;;  %v57_v25 = vmul.f32 %v103_v22, %v40_v17 }
 0x139   :  { %104 = vrcp.f32 %v63_v24  ;;  %v59_v27 = vsel %vm58_vm3, %v40_v17, %v57_v25 }
 0x13a   :  { %v62_v28 = vsel %vm60_vm4, %v61_v26, %v59_v27 }
 0x13b   :  { %v64_v29 = vadd.f32 1e-06, %v62_v28 }
 0x13d   :  { %106 = vrcp.f32 %v64_v29 }
 0x143   :  { %v105_v32 = vpop.eup %104 }
 0x144   :  { %v66_v34 = vmul.f32 %v105_v32, %v47_v31 }
 0x146   :  { %v75_v36 = vadd.f32 %v96_v33, %v66_v34 }
 0x147   :  { %v107_v37 = vpop.eup %106 }
 0x148   :  { %v68_v38 = vmul.f32 %v107_v37, %v48_v35  ;;  %77 = vst.msk [vmem:[#allocation2] sm:$0xff] %vm19_vm0, %v75_v36 }
 0x14a   :  { %v76_v39 = vadd.f32 %v96_v33, %v68_v38 }
 0x14c   :  { %78 = vst.msk [vmem:[#allocation2 + $0x8] sm:$0xff] %vm19_vm0, %v76_v39 }
 0x14d   :  { %119 = shalt.err (!%p116_p4)
}
 0x14e   :  { %s120_s22 = scalar_lea.hbm %s188_s3, 256 }
 0x14f   :  { %p121_p5 = scmp.ne.s32.totalorder %s188_s3, %s120_s22  ;;  %p124_p6 = scmp.lt.u32.totalorder %s120_s22, %s188_s3 }
 0x151   :  { %p126_p7 = pnand %p124_p6, %p121_p5 }
 0x153   :  { %129 = shalt.err (!%p126_p7)
}
 0x154   :  { %s133_s27 = smov 128   ;;  %s134_s28 = smov 8  }
 0x155   :  { %90 = dma.vmem_to_hbm [thread:$0]  %s85_s20, 256, %s188_s3, [#allocation3], %s133_s27, %s133_s27, %s134_s28  }
 0x156   :  { %130 = dma.done.wait [#allocation3], 256  }
 0x157   :  { %131 = vsyncadd [#allocation3], 4294967040 }
 0x158   :  { %94 = vsyncpa [#allocation3], 1 }

</bundles_post_ra>
